<compile_context>
chip_gen: v6e
topology: v6e:2x2x1
jax: 0.10.0
libtpu: 0.0.40
codegen_flags: <defaults>
</compile_context>

<pallas_src>
import functools

import jax
import jax.numpy as jnp
import numpy as np
from jax.experimental import pallas as pl
from jax.experimental.pallas import tpu as pltpu


def _window_attn_kernel(x_ref, wqkv_ref, bqkv_ref, wproj_ref, bproj_ref, o_ref,
                        *, num_heads):
    # x_ref:     (TB, N, C)        TB windows of this grid step
    # wqkv_ref:  (C, 3C)  bf16     qkv weight, transposed, scale folded into Q cols
    # bqkv_ref:  (1, 3C)  f32      qkv bias, scale folded into Q part
    # wproj_ref: (H, hd, C) bf16   proj weight, transposed & split per head
    # bproj_ref: (1, C)   f32
    # o_ref:     (TB, N, C)
    TB, N, C = x_ref.shape
    hd = C // num_heads

    # One lane-dense qkv matmul over all TB*N rows (bf16 in, f32 accumulate).
    x2d = x_ref[...].reshape(TB * N, C).astype(jnp.bfloat16)
    qkv = jnp.dot(x2d, wqkv_ref[...],
                  preferred_element_type=jnp.float32) + bqkv_ref[...]   # (TB*N, 3C)

    y = jnp.zeros((TB * N, C), dtype=jnp.float32)
    for h in range(num_heads):                       # small static head loop
        q_h = qkv[:, 0 * C + h * hd: 0 * C + (h + 1) * hd].reshape(TB, N, hd)
        k_h = qkv[:, 1 * C + h * hd: 1 * C + (h + 1) * hd].reshape(TB, N, hd)
        v_h = qkv[:, 2 * C + h * hd: 2 * C + (h + 1) * hd].reshape(TB, N, hd)

        # Attention logits, batched over the TB windows of this block; the
        # contraction is over the last dims (no explicit transpose feeds the MXU).
        # Scale is already folded into q via the weights.
        s = jnp.einsum('bnd,bmd->bnm',
                       q_h.astype(jnp.bfloat16), k_h.astype(jnp.bfloat16),
                       preferred_element_type=jnp.float32)              # (TB, N, N)
        s = s - jnp.max(s, axis=-1, keepdims=True)
        p = jnp.exp(s)
        p = p * pl.reciprocal(jnp.sum(p, axis=-1, keepdims=True), approx=True)

        ctx = jnp.einsum('bnm,bmd->bnd',
                         p.astype(jnp.bfloat16), v_h.astype(jnp.bfloat16),
                         preferred_element_type=jnp.float32)            # (TB, N, hd)

        # Fold this head's output projection directly into the (TB*N, C) result:
        # y += ctx_h @ Wproj^T[h*hd:(h+1)*hd, :]  — no head re-pack, no .at[].set.
        y = y + jnp.dot(ctx.reshape(TB * N, hd).astype(jnp.bfloat16),
                        wproj_ref[h],
                        preferred_element_type=jnp.float32)

    y = y + bproj_ref[...]
    o_ref[...] = y.reshape(TB, N, C).astype(o_ref.dtype)


def _pick_tb(B_, N, row_target=512):
    """Largest window batch TB dividing B_ with TB*N <= row_target, preferring a
    grid length >= 2 (two TensorCores on v7x)."""
    divisors = [d for d in range(1, B_ + 1) if B_ % d == 0]
    cands = [d for d in divisors if B_ // d >= 2 and d * N <= row_target]
    if cands:
        return max(cands)
    cands = [d for d in divisors if d * N <= row_target]
    return max(cands) if cands else 1


def window_attention(x, wqkv, bqkv, wproj, bproj, num_heads, *, tb=None):
    """x: (B_, N, C).  wqkv: (3C, C), bqkv: (3C,), wproj: (C, C), bproj: (C,)
    — PyTorch nn.Linear conventions (weight is (out, in))."""
    B_, N, C = x.shape
    assert C % num_heads == 0
    hd = C // num_heads
    scale = float(C) ** (-0.5)          # matches the PyTorch module: dim ** -0.5

    if tb is None:
        tb = _pick_tb(B_, N)
    assert B_ % tb == 0, "window batch tb must divide B_"

    # Host-side glue: transpose to (in, out), fold the attention scale into the Q
    # columns (and Q bias), cast weights to bf16 (biases stay f32, added after the
    # f32-accumulated matmuls).
    wqkv_t = jnp.asarray(wqkv, jnp.float32).T                 # (C, 3C)
    wqkv_t = wqkv_t.at[:, :C].multiply(scale)
    bqkv_f = jnp.asarray(bqkv, jnp.float32).at[:C].multiply(scale)
    wproj_t = jnp.asarray(wproj, jnp.float32).T               # (C, C) = (in, out)

    wqkv_bf = wqkv_t.astype(jnp.bfloat16)                                 # (C, 3C)
    wproj_bf = wproj_t.reshape(num_heads, hd, C).astype(jnp.bfloat16)     # (H, hd, C)
    bqkv_2d = bqkv_f.reshape(1, 3 * C)
    bproj_2d = jnp.asarray(bproj, jnp.float32).reshape(1, C)

    kernel = functools.partial(_window_attn_kernel, num_heads=num_heads)

    # NOTE: the weight blocks are grid-invariant; default double buffering of these
    # small bf16 slabs is cheap, so pipeline_mode overrides are omitted for safety.
    return pl.pallas_call(
        kernel,
        out_shape=jax.ShapeDtypeStruct((B_, N, C), x.dtype),
        grid_spec=pltpu.PrefetchScalarGridSpec(
            num_scalar_prefetch=0,
            grid=(B_ // tb,),
            in_specs=[
                pl.BlockSpec((tb, N, C), lambda b: (b, 0, 0)),          # x (TB windows)
                pl.BlockSpec((C, 3 * C), lambda b: (0, 0)),             # wqkv^T (scaled, bf16)
                pl.BlockSpec((1, 3 * C), lambda b: (0, 0)),             # bqkv (scaled, f32)
                pl.BlockSpec((num_heads, hd, C), lambda b: (0, 0, 0)),  # wproj^T per head (bf16)
                pl.BlockSpec((1, C), lambda b: (0, 0)),                 # bproj (f32)
            ],
            out_specs=pl.BlockSpec((tb, N, C), lambda b: (b, 0, 0)),
        ),
        compiler_params=pltpu.CompilerParams(
            dimension_semantics=("parallel",),
            vmem_limit_bytes=48 * 1024 * 1024,
        ),
    )(x, wqkv_bf, bqkv_2d, wproj_bf, bproj_2d)


def window_attention_ref(x, wqkv, bqkv, wproj, bproj, num_heads):
    """Pure-JAX f32 reference matching the PyTorch forward exactly."""
    B_, N, C = x.shape
    scale = float(C) ** (-0.5)
    hd = C // num_heads
    qkv = x @ wqkv.T + bqkv                                   # (B_, N, 3C)
    qkv = qkv.reshape(B_, N, 3, num_heads, hd).transpose(2, 0, 3, 1, 4)
    q, k, v = qkv[0], qkv[1], qkv[2]                          # (B_, H, N, hd)
    attn = jnp.einsum("bhqd,bhkd->bhqk", q, k) * scale
    attn = jax.nn.softmax(attn, axis=-1)
    ctx = jnp.einsum("bhqk,bhkd->bhqd", attn, v)              # (B_, H, N, hd)
    ctx = ctx.transpose(0, 2, 1, 3).reshape(B_, N, C)
    return ctx @ wproj.T + bproj


if __name__ == "__main__":
    key = jax.random.PRNGKey(0)
    # window_size = 4 -> N = 16 tokens per window; 8 windows, C = 32, 4 heads.
    B_, N, C, num_heads = 8, 16, 32, 4

    k0, k1, k2, k3, k4 = jax.random.split(key, 5)
    x = jax.random.normal(k0, (B_, N, C), dtype=jnp.float32)
    wqkv = jax.random.normal(k1, (3 * C, C), dtype=jnp.float32) * 0.05
    bqkv = jax.random.normal(k2, (3 * C,), dtype=jnp.float32) * 0.05
    wproj = jax.random.normal(k3, (C, C), dtype=jnp.float32) * 0.05
    bproj = jax.random.normal(k4, (C,), dtype=jnp.float32) * 0.05

    out = window_attention(x, wqkv, bqkv, wproj, bproj, num_heads)
    out = jax.block_until_ready(out)

    ref = window_attention_ref(x, wqkv, bqkv, wproj, bproj, num_heads)
    # bf16 matmul inputs with f32 accumulation -> relaxed (but tight-for-bf16) tolerance.
    np.testing.assert_allclose(np.asarray(out), np.asarray(ref), rtol=3e-2, atol=3e-2)

    print("KERNEL_OK")
</pallas_src>

<mosaic_0001>
module attributes {stable_mosaic.version = 11 : i64} {
  func.func @_window_attn_kernel(%arg0: i32, %arg1: memref<4x16x32xf32, #tpu.memory_space<vmem>>, %arg2: memref<32x96xbf16, #tpu.memory_space<vmem>>, %arg3: memref<1x96xf32, #tpu.memory_space<vmem>>, %arg4: memref<4x8x32xbf16, #tpu.memory_space<vmem>>, %arg5: memref<1x32xf32, #tpu.memory_space<vmem>>, %arg6: memref<4x16x32xf32, #tpu.memory_space<vmem>>) attributes {dimension_semantics = [#tpu.dimension_semantics<parallel>], iteration_bounds = array<i64: 2>, scalar_prefetch = 0 : i64, scratch_operands = 0 : i64, tpu.core_type = #tpu.core_type<tc>, window_params = [{transform_indices = @transform_0, window_bounds = array<i64: 4, 16, 32>}, {pipeline_mode = #tpu.pipeline_mode<synchronous>, transform_indices = @transform_1, window_bounds = array<i64: 32, 96>}, {pipeline_mode = #tpu.pipeline_mode<synchronous>, transform_indices = @transform_2, window_bounds = array<i64: 1, 96>}, {pipeline_mode = #tpu.pipeline_mode<synchronous>, transform_indices = @transform_3, window_bounds = array<i64: 4, 8, 32>}, {pipeline_mode = #tpu.pipeline_mode<synchronous>, transform_indices = @transform_4, window_bounds = array<i64: 1, 32>}, {transform_indices = @transform_5, window_bounds = array<i64: 4, 16, 32>}]} {
    %c0 = arith.constant 0 : index
    %c0_0 = arith.constant 0 : index
    %c0_1 = arith.constant 0 : index
    %0 = vector.load %arg1[%c0, %c0_0, %c0_1] : memref<4x16x32xf32, #tpu.memory_space<vmem>>, vector<4x16x32xf32>
    %1 = vector.shape_cast %0 : vector<4x16x32xf32> to vector<64x32xf32>
    %2 = arith.truncf %1 : vector<64x32xf32> to vector<64x32xbf16>
    %c0_2 = arith.constant 0 : index
    %c0_3 = arith.constant 0 : index
    %3 = vector.load %arg2[%c0_2, %c0_3] : memref<32x96xbf16, #tpu.memory_space<vmem>>, vector<32x96xbf16>
    %cst = arith.constant dense<0.000000e+00> : vector<64x96xf32>
    %4 = tpu.matmul %2, %3, %cst {dimension_numbers = #tpu.dot_dimension_numbers<[1], [0], [0], [1], [0, 0, 1, 1], [], []>} : vector<64x32xbf16>, vector<32x96xbf16>, vector<64x96xf32> -> vector<64x96xf32>
    %c0_4 = arith.constant 0 : index
    %c0_5 = arith.constant 0 : index
    %5 = vector.load %arg3[%c0_4, %c0_5] : memref<1x96xf32, #tpu.memory_space<vmem>>, vector<1x96xf32>
    %6 = vector.broadcast %5 : vector<1x96xf32> to vector<64x96xf32>
    %7 = arith.addf %4, %6 : vector<64x96xf32>
    %cst_6 = arith.constant 0.000000e+00 : f32
    %8 = vector.broadcast %cst_6 : f32 to vector<64x32xf32>
    %9 = vector.extract_strided_slice %7 {offsets = [0, 0], sizes = [64, 8], strides = [1, 1]} : vector<64x96xf32> to vector<64x8xf32>
    %10 = vector.shape_cast %9 : vector<64x8xf32> to vector<4x16x8xf32>
    %11 = vector.extract_strided_slice %7 {offsets = [0, 32], sizes = [64, 8], strides = [1, 1]} : vector<64x96xf32> to vector<64x8xf32>
    %12 = vector.shape_cast %11 : vector<64x8xf32> to vector<4x16x8xf32>
    %13 = vector.extract_strided_slice %7 {offsets = [0, 64], sizes = [64, 8], strides = [1, 1]} : vector<64x96xf32> to vector<64x8xf32>
    %14 = vector.shape_cast %13 : vector<64x8xf32> to vector<4x16x8xf32>
    %15 = arith.truncf %10 : vector<4x16x8xf32> to vector<4x16x8xbf16>
    %16 = arith.truncf %12 : vector<4x16x8xf32> to vector<4x16x8xbf16>
    "tpu.trace_start"() <{level = 10 : i32, message = "bnd,bmd->bnm"}> : () -> ()
    %cst_7 = arith.constant dense<0.000000e+00> : vector<4x16x16xf32>
    %17 = tpu.matmul %15, %16, %cst_7 {dimension_numbers = #tpu.dot_dimension_numbers<[2], [2], [1], [1], [0, 0, 0, 1, 1, 1], [0], [0]>} : vector<4x16x8xbf16>, vector<4x16x8xbf16>, vector<4x16x16xf32> -> vector<4x16x16xf32>
    "tpu.trace_stop"() : () -> ()
    %cst_8 = arith.constant dense<0xFF800000> : vector<4x16xf32>
    %18 = vector.multi_reduction <maximumf>, %17, %cst_8 [2] : vector<4x16x16xf32> to vector<4x16xf32>
    %19 = vector.shape_cast %18 : vector<4x16xf32> to vector<4x16x1xf32>
    %20 = vector.broadcast %19 : vector<4x16x1xf32> to vector<4x16x16xf32>
    %21 = arith.subf %17, %20 : vector<4x16x16xf32>
    %22 = math.exp %21 : vector<4x16x16xf32>
    %cst_9 = arith.constant dense<0.000000e+00> : vector<4x16xf32>
    %23 = vector.multi_reduction <add>, %22, %cst_9 [2] : vector<4x16x16xf32> to vector<4x16xf32>
    %24 = vector.shape_cast %23 : vector<4x16xf32> to vector<4x16x1xf32>
    %25 = tpu.reciprocal %24 {approx = true} : vector<4x16x1xf32> -> vector<4x16x1xf32>
    %26 = vector.broadcast %25 : vector<4x16x1xf32> to vector<4x16x16xf32>
    %27 = arith.mulf %22, %26 : vector<4x16x16xf32>
    %28 = arith.truncf %27 : vector<4x16x16xf32> to vector<4x16x16xbf16>
    %29 = arith.truncf %14 : vector<4x16x8xf32> to vector<4x16x8xbf16>
    "tpu.trace_start"() <{level = 10 : i32, message = "bnm,bmd->bnd"}> : () -> ()
    %cst_10 = arith.constant dense<0.000000e+00> : vector<4x16x8xf32>
    %30 = tpu.matmul %28, %29, %cst_10 {dimension_numbers = #tpu.dot_dimension_numbers<[2], [1], [1], [2], [0, 0, 0, 1, 1, 2], [0], [0]>} : vector<4x16x16xbf16>, vector<4x16x8xbf16>, vector<4x16x8xf32> -> vector<4x16x8xf32>
    "tpu.trace_stop"() : () -> ()
    %31 = vector.shape_cast %30 : vector<4x16x8xf32> to vector<64x8xf32>
    %32 = arith.truncf %31 : vector<64x8xf32> to vector<64x8xbf16>
    %c0_11 = arith.constant 0 : index
    %c0_12 = arith.constant 0 : index
    %c0_13 = arith.constant 0 : index
    %33 = vector.load %arg4[%c0_11, %c0_12, %c0_13] : memref<4x8x32xbf16, #tpu.memory_space<vmem>>, vector<1x8x32xbf16>
    %34 = vector.shape_cast %33 : vector<1x8x32xbf16> to vector<8x32xbf16>
    %cst_14 = arith.constant dense<0.000000e+00> : vector<64x32xf32>
    %35 = tpu.matmul %32, %34, %cst_14 {dimension_numbers = #tpu.dot_dimension_numbers<[1], [0], [0], [1], [0, 0, 1, 1], [], []>} : vector<64x8xbf16>, vector<8x32xbf16>, vector<64x32xf32> -> vector<64x32xf32>
    %36 = arith.addf %8, %35 : vector<64x32xf32>
    %37 = vector.extract_strided_slice %7 {offsets = [0, 8], sizes = [64, 8], strides = [1, 1]} : vector<64x96xf32> to vector<64x8xf32>
    %38 = vector.shape_cast %37 : vector<64x8xf32> to vector<4x16x8xf32>
    %39 = vector.extract_strided_slice %7 {offsets = [0, 40], sizes = [64, 8], strides = [1, 1]} : vector<64x96xf32> to vector<64x8xf32>
    %40 = vector.shape_cast %39 : vector<64x8xf32> to vector<4x16x8xf32>
    %41 = vector.extract_strided_slice %7 {offsets = [0, 72], sizes = [64, 8], strides = [1, 1]} : vector<64x96xf32> to vector<64x8xf32>
    %42 = vector.shape_cast %41 : vector<64x8xf32> to vector<4x16x8xf32>
    %43 = arith.truncf %38 : vector<4x16x8xf32> to vector<4x16x8xbf16>
    %44 = arith.truncf %40 : vector<4x16x8xf32> to vector<4x16x8xbf16>
    "tpu.trace_start"() <{level = 10 : i32, message = "bnd,bmd->bnm"}> : () -> ()
    %cst_15 = arith.constant dense<0.000000e+00> : vector<4x16x16xf32>
    %45 = tpu.matmul %43, %44, %cst_15 {dimension_numbers = #tpu.dot_dimension_numbers<[2], [2], [1], [1], [0, 0, 0, 1, 1, 1], [0], [0]>} : vector<4x16x8xbf16>, vector<4x16x8xbf16>, vector<4x16x16xf32> -> vector<4x16x16xf32>
    "tpu.trace_stop"() : () -> ()
    %cst_16 = arith.constant dense<0xFF800000> : vector<4x16xf32>
    %46 = vector.multi_reduction <maximumf>, %45, %cst_16 [2] : vector<4x16x16xf32> to vector<4x16xf32>
    %47 = vector.shape_cast %46 : vector<4x16xf32> to vector<4x16x1xf32>
    %48 = vector.broadcast %47 : vector<4x16x1xf32> to vector<4x16x16xf32>
    %49 = arith.subf %45, %48 : vector<4x16x16xf32>
    %50 = math.exp %49 : vector<4x16x16xf32>
    %cst_17 = arith.constant dense<0.000000e+00> : vector<4x16xf32>
    %51 = vector.multi_reduction <add>, %50, %cst_17 [2] : vector<4x16x16xf32> to vector<4x16xf32>
    %52 = vector.shape_cast %51 : vector<4x16xf32> to vector<4x16x1xf32>
    %53 = tpu.reciprocal %52 {approx = true} : vector<4x16x1xf32> -> vector<4x16x1xf32>
    %54 = vector.broadcast %53 : vector<4x16x1xf32> to vector<4x16x16xf32>
    %55 = arith.mulf %50, %54 : vector<4x16x16xf32>
    %56 = arith.truncf %55 : vector<4x16x16xf32> to vector<4x16x16xbf16>
    %57 = arith.truncf %42 : vector<4x16x8xf32> to vector<4x16x8xbf16>
    "tpu.trace_start"() <{level = 10 : i32, message = "bnm,bmd->bnd"}> : () -> ()
    %cst_18 = arith.constant dense<0.000000e+00> : vector<4x16x8xf32>
    %58 = tpu.matmul %56, %57, %cst_18 {dimension_numbers = #tpu.dot_dimension_numbers<[2], [1], [1], [2], [0, 0, 0, 1, 1, 2], [0], [0]>} : vector<4x16x16xbf16>, vector<4x16x8xbf16>, vector<4x16x8xf32> -> vector<4x16x8xf32>
    "tpu.trace_stop"() : () -> ()
    %59 = vector.shape_cast %58 : vector<4x16x8xf32> to vector<64x8xf32>
    %60 = arith.truncf %59 : vector<64x8xf32> to vector<64x8xbf16>
    %c1 = arith.constant 1 : index
    %c0_19 = arith.constant 0 : index
    %c0_20 = arith.constant 0 : index
    %61 = vector.load %arg4[%c1, %c0_19, %c0_20] : memref<4x8x32xbf16, #tpu.memory_space<vmem>>, vector<1x8x32xbf16>
    %62 = vector.shape_cast %61 : vector<1x8x32xbf16> to vector<8x32xbf16>
    %cst_21 = arith.constant dense<0.000000e+00> : vector<64x32xf32>
    %63 = tpu.matmul %60, %62, %cst_21 {dimension_numbers = #tpu.dot_dimension_numbers<[1], [0], [0], [1], [0, 0, 1, 1], [], []>} : vector<64x8xbf16>, vector<8x32xbf16>, vector<64x32xf32> -> vector<64x32xf32>
    %64 = arith.addf %36, %63 : vector<64x32xf32>
    %65 = vector.extract_strided_slice %7 {offsets = [0, 16], sizes = [64, 8], strides = [1, 1]} : vector<64x96xf32> to vector<64x8xf32>
    %66 = vector.shape_cast %65 : vector<64x8xf32> to vector<4x16x8xf32>
    %67 = vector.extract_strided_slice %7 {offsets = [0, 48], sizes = [64, 8], strides = [1, 1]} : vector<64x96xf32> to vector<64x8xf32>
    %68 = vector.shape_cast %67 : vector<64x8xf32> to vector<4x16x8xf32>
    %69 = vector.extract_strided_slice %7 {offsets = [0, 80], sizes = [64, 8], strides = [1, 1]} : vector<64x96xf32> to vector<64x8xf32>
    %70 = vector.shape_cast %69 : vector<64x8xf32> to vector<4x16x8xf32>
    %71 = arith.truncf %66 : vector<4x16x8xf32> to vector<4x16x8xbf16>
    %72 = arith.truncf %68 : vector<4x16x8xf32> to vector<4x16x8xbf16>
    "tpu.trace_start"() <{level = 10 : i32, message = "bnd,bmd->bnm"}> : () -> ()
    %cst_22 = arith.constant dense<0.000000e+00> : vector<4x16x16xf32>
    %73 = tpu.matmul %71, %72, %cst_22 {dimension_numbers = #tpu.dot_dimension_numbers<[2], [2], [1], [1], [0, 0, 0, 1, 1, 1], [0], [0]>} : vector<4x16x8xbf16>, vector<4x16x8xbf16>, vector<4x16x16xf32> -> vector<4x16x16xf32>
    "tpu.trace_stop"() : () -> ()
    %cst_23 = arith.constant dense<0xFF800000> : vector<4x16xf32>
    %74 = vector.multi_reduction <maximumf>, %73, %cst_23 [2] : vector<4x16x16xf32> to vector<4x16xf32>
    %75 = vector.shape_cast %74 : vector<4x16xf32> to vector<4x16x1xf32>
    %76 = vector.broadcast %75 : vector<4x16x1xf32> to vector<4x16x16xf32>
    %77 = arith.subf %73, %76 : vector<4x16x16xf32>
    %78 = math.exp %77 : vector<4x16x16xf32>
    %cst_24 = arith.constant dense<0.000000e+00> : vector<4x16xf32>
    %79 = vector.multi_reduction <add>, %78, %cst_24 [2] : vector<4x16x16xf32> to vector<4x16xf32>
    %80 = vector.shape_cast %79 : vector<4x16xf32> to vector<4x16x1xf32>
    %81 = tpu.reciprocal %80 {approx = true} : vector<4x16x1xf32> -> vector<4x16x1xf32>
    %82 = vector.broadcast %81 : vector<4x16x1xf32> to vector<4x16x16xf32>
    %83 = arith.mulf %78, %82 : vector<4x16x16xf32>
    %84 = arith.truncf %83 : vector<4x16x16xf32> to vector<4x16x16xbf16>
    %85 = arith.truncf %70 : vector<4x16x8xf32> to vector<4x16x8xbf16>
    "tpu.trace_start"() <{level = 10 : i32, message = "bnm,bmd->bnd"}> : () -> ()
    %cst_25 = arith.constant dense<0.000000e+00> : vector<4x16x8xf32>
    %86 = tpu.matmul %84, %85, %cst_25 {dimension_numbers = #tpu.dot_dimension_numbers<[2], [1], [1], [2], [0, 0, 0, 1, 1, 2], [0], [0]>} : vector<4x16x16xbf16>, vector<4x16x8xbf16>, vector<4x16x8xf32> -> vector<4x16x8xf32>
    "tpu.trace_stop"() : () -> ()
    %87 = vector.shape_cast %86 : vector<4x16x8xf32> to vector<64x8xf32>
    %88 = arith.truncf %87 : vector<64x8xf32> to vector<64x8xbf16>
    %c2 = arith.constant 2 : index
    %c0_26 = arith.constant 0 : index
    %c0_27 = arith.constant 0 : index
    %89 = vector.load %arg4[%c2, %c0_26, %c0_27] : memref<4x8x32xbf16, #tpu.memory_space<vmem>>, vector<1x8x32xbf16>
    %90 = vector.shape_cast %89 : vector<1x8x32xbf16> to vector<8x32xbf16>
    %cst_28 = arith.constant dense<0.000000e+00> : vector<64x32xf32>
    %91 = tpu.matmul %88, %90, %cst_28 {dimension_numbers = #tpu.dot_dimension_numbers<[1], [0], [0], [1], [0, 0, 1, 1], [], []>} : vector<64x8xbf16>, vector<8x32xbf16>, vector<64x32xf32> -> vector<64x32xf32>
    %92 = arith.addf %64, %91 : vector<64x32xf32>
    %93 = vector.extract_strided_slice %7 {offsets = [0, 24], sizes = [64, 8], strides = [1, 1]} : vector<64x96xf32> to vector<64x8xf32>
    %94 = vector.shape_cast %93 : vector<64x8xf32> to vector<4x16x8xf32>
    %95 = vector.extract_strided_slice %7 {offsets = [0, 56], sizes = [64, 8], strides = [1, 1]} : vector<64x96xf32> to vector<64x8xf32>
    %96 = vector.shape_cast %95 : vector<64x8xf32> to vector<4x16x8xf32>
    %97 = vector.extract_strided_slice %7 {offsets = [0, 88], sizes = [64, 8], strides = [1, 1]} : vector<64x96xf32> to vector<64x8xf32>
    %98 = vector.shape_cast %97 : vector<64x8xf32> to vector<4x16x8xf32>
    %99 = arith.truncf %94 : vector<4x16x8xf32> to vector<4x16x8xbf16>
    %100 = arith.truncf %96 : vector<4x16x8xf32> to vector<4x16x8xbf16>
    "tpu.trace_start"() <{level = 10 : i32, message = "bnd,bmd->bnm"}> : () -> ()
    %cst_29 = arith.constant dense<0.000000e+00> : vector<4x16x16xf32>
    %101 = tpu.matmul %99, %100, %cst_29 {dimension_numbers = #tpu.dot_dimension_numbers<[2], [2], [1], [1], [0, 0, 0, 1, 1, 1], [0], [0]>} : vector<4x16x8xbf16>, vector<4x16x8xbf16>, vector<4x16x16xf32> -> vector<4x16x16xf32>
    "tpu.trace_stop"() : () -> ()
    %cst_30 = arith.constant dense<0xFF800000> : vector<4x16xf32>
    %102 = vector.multi_reduction <maximumf>, %101, %cst_30 [2] : vector<4x16x16xf32> to vector<4x16xf32>
    %103 = vector.shape_cast %102 : vector<4x16xf32> to vector<4x16x1xf32>
    %104 = vector.broadcast %103 : vector<4x16x1xf32> to vector<4x16x16xf32>
    %105 = arith.subf %101, %104 : vector<4x16x16xf32>
    %106 = math.exp %105 : vector<4x16x16xf32>
    %cst_31 = arith.constant dense<0.000000e+00> : vector<4x16xf32>
    %107 = vector.multi_reduction <add>, %106, %cst_31 [2] : vector<4x16x16xf32> to vector<4x16xf32>
    %108 = vector.shape_cast %107 : vector<4x16xf32> to vector<4x16x1xf32>
    %109 = tpu.reciprocal %108 {approx = true} : vector<4x16x1xf32> -> vector<4x16x1xf32>
    %110 = vector.broadcast %109 : vector<4x16x1xf32> to vector<4x16x16xf32>
    %111 = arith.mulf %106, %110 : vector<4x16x16xf32>
    %112 = arith.truncf %111 : vector<4x16x16xf32> to vector<4x16x16xbf16>
    %113 = arith.truncf %98 : vector<4x16x8xf32> to vector<4x16x8xbf16>
    "tpu.trace_start"() <{level = 10 : i32, message = "bnm,bmd->bnd"}> : () -> ()
    %cst_32 = arith.constant dense<0.000000e+00> : vector<4x16x8xf32>
    %114 = tpu.matmul %112, %113, %cst_32 {dimension_numbers = #tpu.dot_dimension_numbers<[2], [1], [1], [2], [0, 0, 0, 1, 1, 2], [0], [0]>} : vector<4x16x16xbf16>, vector<4x16x8xbf16>, vector<4x16x8xf32> -> vector<4x16x8xf32>
    "tpu.trace_stop"() : () -> ()
    %115 = vector.shape_cast %114 : vector<4x16x8xf32> to vector<64x8xf32>
    %116 = arith.truncf %115 : vector<64x8xf32> to vector<64x8xbf16>
    %c3 = arith.constant 3 : index
    %c0_33 = arith.constant 0 : index
    %c0_34 = arith.constant 0 : index
    %117 = vector.load %arg4[%c3, %c0_33, %c0_34] : memref<4x8x32xbf16, #tpu.memory_space<vmem>>, vector<1x8x32xbf16>
    %118 = vector.shape_cast %117 : vector<1x8x32xbf16> to vector<8x32xbf16>
    %cst_35 = arith.constant dense<0.000000e+00> : vector<64x32xf32>
    %119 = tpu.matmul %116, %118, %cst_35 {dimension_numbers = #tpu.dot_dimension_numbers<[1], [0], [0], [1], [0, 0, 1, 1], [], []>} : vector<64x8xbf16>, vector<8x32xbf16>, vector<64x32xf32> -> vector<64x32xf32>
    %120 = arith.addf %92, %119 : vector<64x32xf32>
    %c0_36 = arith.constant 0 : index
    %c0_37 = arith.constant 0 : index
    %121 = vector.load %arg5[%c0_36, %c0_37] : memref<1x32xf32, #tpu.memory_space<vmem>>, vector<1x32xf32>
    %122 = vector.broadcast %121 : vector<1x32xf32> to vector<64x32xf32>
    %123 = arith.addf %120, %122 : vector<64x32xf32>
    %124 = vector.shape_cast %123 : vector<64x32xf32> to vector<4x16x32xf32>
    %c0_38 = arith.constant 0 : index
    %c0_39 = arith.constant 0 : index
    %c0_40 = arith.constant 0 : index
    %125 = vector.load %arg6[%c0_38, %c0_39, %c0_40] : memref<4x16x32xf32, #tpu.memory_space<vmem>>, vector<4x16x32xf32>
    tpu.vector_store %arg6[%c0_38, %c0_39, %c0_40], %124 {strides = array<i32>} : memref<4x16x32xf32, #tpu.memory_space<vmem>>, vector<4x16x32xf32>,
    return
  }
  func.func @transform_0(%arg0: i32) -> (i32, i32, i32) {
    %c0_i32 = arith.constant 0 : i32
    %c0_i32_0 = arith.constant 0 : i32
    %c0_i32_1 = arith.constant 0 : i32
    return %arg0, %c0_i32, %c0_i32_0 : i32, i32, i32
  }
  func.func @transform_1(%arg0: i32) -> (i32, i32) {
    %c0_i32 = arith.constant 0 : i32
    %c0_i32_0 = arith.constant 0 : i32
    %c0_i32_1 = arith.constant 0 : i32
    return %c0_i32, %c0_i32_0 : i32, i32
  }
  func.func @transform_2(%arg0: i32) -> (i32, i32) {
    %c0_i32 = arith.constant 0 : i32
    %c0_i32_0 = arith.constant 0 : i32
    %c0_i32_1 = arith.constant 0 : i32
    return %c0_i32, %c0_i32_0 : i32, i32
  }
  func.func @transform_3(%arg0: i32) -> (i32, i32, i32) {
    %c0_i32 = arith.constant 0 : i32
    %c0_i32_0 = arith.constant 0 : i32
    %c0_i32_1 = arith.constant 0 : i32
    %c0_i32_2 = arith.constant 0 : i32
    return %c0_i32, %c0_i32_0, %c0_i32_1 : i32, i32, i32
  }
  func.func @transform_4(%arg0: i32) -> (i32, i32) {
    %c0_i32 = arith.constant 0 : i32
    %c0_i32_0 = arith.constant 0 : i32
    %c0_i32_1 = arith.constant 0 : i32
    return %c0_i32, %c0_i32_0 : i32, i32
  }
  func.func @transform_5(%arg0: i32) -> (i32, i32, i32) {
    %c0_i32 = arith.constant 0 : i32
    %c0_i32_0 = arith.constant 0 : i32
    %c0_i32_1 = arith.constant 0 : i32
    return %arg0, %c0_i32, %c0_i32_0 : i32, i32, i32
  }
}

</mosaic_0001>

<bundles_post_ra>
// kernel: tpu_custom_call.1
= control target key start
LH: loop header
LB: loop body
LE: loop exit
PB: predicated region body
PF: predicated region fallthrough
CT: control target
= control target key end

     0   :  { %10 = vsyncpa [#allocation3], 0  ;;  %s4360_s0 = inlined_call_operand.hbm [shape: f32[8,16,32], index: 0, kind: input, shape index: {}]   ;;  %s4361_s1 = inlined_call_operand.hbm [shape: bf16[32,96], index: 1, kind: input, shape index: {}]   ;;  %s4362_s2 = inlined_call_operand.vmem [shape: f32[1,96], index: 2, kind: input, shape index: {}]   ;;  %s4363_s3 = inlined_call_operand.hbm [shape: bf16[4,8,32], index: 3, kind: input, shape index: {}]   ;;  %s4364_s4 = inlined_call_operand.vmem [shape: f32[1,32], index: 4, kind: input, shape index: {}]   ;;  %s4365_s5 = inlined_call_operand.hbm [shape: f32[8,16,32], index: 5, kind: output, shape index: {}]  }
   0x1   :  { %12 = vsyncpa [#allocation3 + $0x1], 0 }
   0x2   :  { %13 = vsyncpa [#allocation6], 0 }
   0x3   :  { %14 = vsyncpa [#allocation4], 0 }
   0x4   :  { %16 = vsyncpa [#allocation4 + $0x1], 0  ;;  %s3658_s18 = smov 0   ;;  %s3660_s19 = smov 0  }
   0x5   :  { %s3662_s20 = smov 0   ;;  %s3664_s21 = smov 0  }
   0x6 LB: > { %s3679_s22 = sadd.s32 4294967295, %s3603_s21   ;;  %s2817_s23 = sadd.s32 4294967294, %s3603_s21   ;;  %s3603_s21 = sphi %s3664_s21, %s4387_s21   ;;  %s3599_s20 = sphi %s3662_s20, %s4386_s20   ;;  %s3595_s19 = sphi %s3660_s19, %s4385_s19   ;;  %s3591_s18 = sphi %s3658_s18, %s4384_s18  }
   0x7   : > { %p42_p0 = scmp.ne.s32.totalorder %s3595_s19, %s3591_s18  ;;  %p4366_p1 = scmp.eq.s32.totalorder %s3679_s22, 0 }
   0x8   : > { %p156_p3 = scmp.eq.s32.totalorder %s2817_s23, 1  ;;  %p2818_p5 = scmp.ge.s32.totalorder %s3603_s21, 1 }
   0x9   : > { %p3688_p4 = por %p4366_p1, %p42_p0  ;;  %p163_p7 = scmp.lt.s32.totalorder %s3603_s21, 3 }
   0xa   : > { %p3693_p6 = por %p156_p3, %p42_p0  ;;  %s3605_s27 = smov [#allocation5]  }
   0xb   : > { %s4370_s24 = scalar_select %p3688_p4, 1, 0 }
   0xc   : > { %s4371_s25 = scalar_select %p3693_p6, 1, 0 }
   0xd   : > { %p3698_p8 = pnand %p2818_p5, %p163_p7  ;;  %s175_s28 = sshll.u32 %s3605_s27, 4  ;;  %s176_s28 = int_to_ptr.vmem [resolvable:$true] %s175_s28 }
   0xe   : > { %s3606_s30 = smov [#allocation7]   ;;  %s3466_s7 = scalar_lea.vmem %s176_s28, 256 }
   0xf   : > { %s4372_s26 = scalar_select %p3698_p8, 1, 0 }
  0x10   : > { %p3251_p9 = pneg %p3698_p8  ;;  %s191_s6 = sshll.u32 %s3606_s30, 4  ;;  %s192_s6 = int_to_ptr.vmem [resolvable:$true] %s191_s6 }
  0x11   : > { %p3467_p13 = scmp.ne.s32.totalorder %s176_s28, %s3466_s7  ;;  %p3474_p5 = scmp.lt.s32.totalorder %s176_s28, %s176_s28 }
  0x12   : > { %p3707_p11 = pnand %p3251_p9, %p4366_p1  ;;  %p3475_p7 = scmp.lt.s32.totalorder %s3466_s7, %s3466_s7 }
  0x14   : > { %p3457_p12 = pneg %p3707_p11  ;;  %p3476_p10 = por %p3475_p7, %p3474_p5 }
  0x16   : > { %p3469_p0 = pnand %p3467_p13, %p3457_p12 }
  0x18   : > { %p3470_p3 = pneg %p3469_p0 }
  0x1a   : > { %p3477_p9 = pnand %p3476_p10, %p3470_p3 }
  0x1c   : > { %3480 = shalt.err (!%p3477_p9)
}
  0x1d   : > { %s3607_s8 = smov 64   ;;  %s3608_s9 = smov 4  }
  0x1e   : > { %3254 = dma.hbm_to_vmem [thread:$0]  (!%p3707_p11), %s4361_s1, 256, %s176_s28, [#allocation6], %s3607_s8, %s3607_s8, %s3608_s9  }
  0x1f   : > { %s3492_s12 = scalar_lea.vmem %s192_s6, 256  ;;  %p3500_p2 = scmp.lt.s32.totalorder %s192_s6, %s192_s6 }
  0x20   : > { %p3493_p1 = scmp.ne.s32.totalorder %s192_s6, %s3492_s12  ;;  %p3501_p6 = scmp.lt.s32.totalorder %s3492_s12, %s3492_s12 }
  0x22   : > { %p3495_p13 = pnand %p3493_p1, %p3457_p12  ;;  %p3502_p5 = por %p3501_p6, %p3500_p2 }
  0x24   : > { %p3496_p0 = pneg %p3495_p13 }
  0x26   : > { %p3503_p10 = pnand %p3502_p5, %p3496_p0 }
  0x28   : > { %3506 = shalt.err (!%p3503_p10)
}
  0x29   : > { %3257 = dma.hbm_to_vmem [thread:$0]  (!%p3707_p11), %s4363_s3, 256, %s192_s6, [#allocation6], %s3607_s8, %s3607_s8, %s3608_s9  }
  0x2a   : > { %s3730_s15 = sadd.s32 1, %s3603_s21   ;;  %s29_s16 = sadd.s32 1, %s3599_s20 }
  0x2b   : > { %s26_s17 = ssub.s32 %s3603_s21, %s3730_s15  ;;  %p36_p1 = scmp.ne.s32.totalorder %s3599_s20, %s3595_s19 }
  0x2c   : > { %p27_p2 = scmp.eq.s32.totalorder %s26_s17, 0  ;;  %p37_p6 = scmp.eq.s32.totalorder %s3603_s21, 0 }
  0x2d   : > { %p4374_p12 = scmp.eq.s32.totalorder %s3679_s22, 1  ;;  %p3268_p7 = scmp.lt.s32.totalorder %s3603_s21, 2 }
  0x2e   : > { %s3746_s27 = scalar_select %p27_p2, %s3599_s20, %s29_s16  }
  0x2f   : > { %p3740_p3 = por %p4374_p12, %p36_p1  ;;  %p38_p9 = por %p37_p6, %p36_p1 }
  0x30   : > { %s208_s28 = sand.u32 1, %s3599_s20   ;;  %s2894_s30 = sshll.u32 %s3603_s21, 10 }
  0x31   : > { %s4375_s23 = scalar_select %p3740_p3, 1, 0 }
  0x32   : > { %s2822_s29 = sshll.u32 %s208_s28, 6  ;;  %s3753_s8 = scalar_lea.hbm %s4360_s0, %s2894_s30 }
  0x33   : > { %s212_s9 = scalar_lea.vmem [#allocation2], %s2822_s29  ;;  %p3757_p11 = pnand %p3268_p7, %p38_p9 }
  0x34   : > { %s220_s10 = sshll.u32 %s212_s9, 4  ;;  %s3761_s12 = scalar_lea.sflag [#allocation3], %s208_s28  ;;  %s3755_s10 = int_to_ptr.vmem [resolvable:$true] %s220_s10 }
  0x35   : > { %s3507_s13 = scalar_lea.hbm %s3753_s8, 1024  ;;  %p3509_p0 = pneg %p3757_p11 }
  0x36   : > { %p3508_p13 = scmp.ne.s32.totalorder %s3753_s8, %s3507_s13  ;;  %s3512_s17 = scalar_lea.hbm %s4360_s0, 2048 }
  0x37   : > { %p3513_p1 = scmp.lt.s32.totalorder %s3753_s8, %s4360_s0  ;;  %p3514_p2 = scmp.lt.s32.totalorder %s3512_s17, %s3507_s13 }
  0x38   : > { %p3510_p5 = pnand %p3509_p0, %p3508_p13 }
  0x39   : > { %p3515_p6 = por %p3514_p2, %p3513_p1 }
  0x3a   : > { %p3511_p10 = pneg %p3510_p5 }
  0x3c   : > { %p3516_p12 = pnand %p3515_p6, %p3511_p10 }
  0x3e   : > { %3519 = shalt.err (!%p3516_p12)
}
  0x3f   : > { %s3520_s28 = scalar_lea.vmem %s3755_s10, 1024  ;;  %s3609_s6 = smov [#allocation2]  }
  0x40   : > { %p3521_p7 = scmp.ne.s32.totalorder %s3755_s10, %s3520_s28  ;;  %s3525_s7 = sshll.u32 %s3609_s6, 4  ;;  %s3526_s7 = int_to_ptr.vmem [resolvable:$false] %s3525_s7 }
  0x41   : > { %s3527_s9 = scalar_lea.vmem %s3526_s7, 2048  ;;  %p3528_p5 = scmp.lt.s32.totalorder %s3755_s10, %s3526_s7 }
  0x42   : > { %p3523_p9 = pnand %p3521_p7, %p3509_p0  ;;  %p3529_p3 = scmp.lt.s32.totalorder %s3527_s9, %s3520_s28 }
  0x44   : > { %p3524_p13 = pneg %p3523_p9  ;;  %p3530_p4 = por %p3529_p3, %p3528_p5 }
  0x46   : > { %p3531_p8 = pnand %p3530_p4, %p3524_p13 }
  0x48   : > { %3534 = shalt.err (!%p3531_p8)
}
  0x49   : > { %s3610_s13 = smov 128   ;;  %s3611_s14 = smov 8  }
  0x4a   : > { %3261 = dma.hbm_to_vmem [thread:$0]  (!%p3757_p11), %s3753_s8, 1024, %s3755_s10, %s3761_s12, %s3610_s13, %s3610_s13, %s3611_s14  }
  0x4b   : > { %p4377_p0 = scmp.ne.s32.totalorder %s4372_s26, 0 }
  0x4c   : > { %s3785_s16 = sand.u32 (!%p4377_p0), 1, %s3595_s19   ;;  %p4378_p4 = scmp.ne.s32.totalorder (!%p4377_p0), %s4370_s24, 0 }
  0x4d   : > { %232 = sbr.rel (%p4377_p0) target bundleno = 3505 (0xdb1), region = 40  ;;  %s2827_s17 = sshll.u32 (!%p4377_p0), %s3785_s16, 6 }
  0x4e   : > { %s235_s29 = scalar_lea.sflag (!%p4377_p0), [#allocation3], %s3785_s16  ;;  %s238_s30 = scalar_lea.vmem (!%p4377_p0), [#allocation2], %s2827_s17 }
  0x52   : > { %3578 = dma.done.wait (%p4378_p4), %s235_s29, 1024  }
  0x53   : > { %3580 = vsyncadd (%p4378_p4), %s235_s29, 4294966272  ;;  %p4379_p8 = scmp.eq.s32.totalorder %s3679_s22, 0 }
  0x55   : > { %3582 = dma.done.wait (%p4379_p8), [#allocation6], 512   ;;  %p4380_p3 = pmov %p4379_p8 }
  0x56   : > { %v3325_v0 = vld [vmem:[#allocation5 + $0x8] sm:$0xff]   ;;  %v3326_v1 = vld [vmem:[#allocation5] sm:$0xff]   ;;  %vm311_vm0 = vcmask 261120   ;;  %v278_v7 = vld [vmem:[%s238_s30 + $0x10] sm:$0xff]  ;;  %v3612_v14 = vmov 0.0   ;;  %vm3613_vm1 = vmmov 0  }
  0x57   : > { %3584 = vsyncadd (%p4380_p3), [#allocation6], 4294966784  ;;  %2987 = vmatprep.subr.bf16.mxu0 %v3325_v0  ;;  %3231 = vmatprep.subr.bf16.mxu1 %v3325_v0  ;;  %v276_v2 = vld [vmem:[%s238_s30] sm:$0xff]  ;;  %v277_v3 = vld [vmem:[%s238_s30 + $0x8] sm:$0xff]  ;;  %s3614_s8 = smov 96   ;;  %vm396_vm2 = vcmask 64512  }
  0x58   : > { %v280_v4 = vld [vmem:[%s238_s30 + $0x20] sm:$0xff]  ;;  %2988 = vmatpush3.bf16.msra.mxu0 %v3325_v0  ;;  %3233 = vmatpush3.bf16.msra.mxu1 %v3325_v0  ;;  %v284_v5 = vpack.c.bf16 %v277_v3, %v276_v2  ;;  %v281_v6 = vld [vmem:[%s238_s30 + $0x28] sm:$0xff]  ;;  %v279_v8 = vld [vmem:[%s238_s30 + $0x18] sm:$0xff]  ;;  %vm594_vm3 = vcmask 130048   ;;  %s3615_s10 = smov 64   ;;  %s3616_s11 = smov 88  }
  0x59   : > { %2989 = vmatprep.subr.bf16.mxu0 %v3326_v1  ;;  %3232 = vmatprep.subr.bf16.mxu1 %v3326_v1  ;;  %v286_v9 = vpack.c.bf16 %v281_v6, %v280_v4  ;;  %v282_v10 = vld [vmem:[%s238_s30 + $0x30] sm:$0xff]  ;;  %v283_v11 = vld [vmem:[%s238_s30 + $0x38] sm:$0xff]  ;;  %v285_v12 = vpack.c.bf16 %v279_v8, %v278_v7  ;;  %v2831_v19 = vld [vmem:[%s4362_s2] ss:$0 sm:$0xff]  ;;  %s3617_s12 = smov 120   ;;  %s3618_s28 = smov 56  }
  0x5a   : > { %2991 = vmatprep.mubr.msk.bf16.mxu0 %vm311_vm0, %v284_v5  ;;  %v287_v13 = vpack.c.bf16 %v283_v11, %v282_v10  ;;  %s3619_s6 = smov 80   ;;  %s3620_s7 = smov 112   ;;  %vm1382_vm4 = vcmask 1043456  }
  0x5b   : > { %2995 = vmatprep.mubr.msk.bf16.mxu1 %vm311_vm0, %v286_v9  ;;  %s3621_s9 = smov 48   ;;  %s3622_s13 = smov 72  }
  0x5c   : > { %2990 = vmatpush3.bf16.msra.mxu0 %v3326_v1  ;;  %3234 = vmatpush3.bf16.msra.mxu1 %v3326_v1  ;;  %s3623_s14 = smov 104   ;;  %s3624_s29 = smov 40  }
  0x5d   : > { %2999 = vmatprep.subr.bf16.mxu1 %v3612_v14  ;;  %3011 = vmatprep.subr.bf16.mxu0 %v3612_v14  ;;  %s272_s26 = scalar_lea.vmem [#allocation8], %s2827_s17  ;;  %s2896_s17 = sshll.u32 %s3679_s22, 10 }
  0x5e   : > { %s2711_s22 = scalar_lea.sflag [#allocation4], %s3785_s16  ;;  %p4381_p10 = scmp.ne.s32.totalorder %s4375_s23, 0 }
  0x5f   : > { %2992 = vmatmul.mubr.msk.bf16.vlgmr.msra.gmra.mxu0 %vm311_vm0, %v285_v12  ;;  %2996 = vmatmul.mubr.msk.bf16.vlgmr.msra.gmra.mxu1 %vm311_vm0, %v287_v13 }
  0x60   : > { %3001 = vmatprep.mubr.msk.bf16.mxu1 %vm3613_vm1, %v3612_v14  ;;  %3013 = vmatprep.mubr.msk.bf16.mxu0 %vm3613_vm1, %v3612_v14 }
 0x11f   : > { %v2993_v15 = vpop.f32.mrf.mxu0  ;;  %v2997_v16 = vpop.f32.mrf.mxu1 }
 0x120   : > { %v383_v28 = vadd.f32 %v2997_v16, %v2831_v19  ;;  %v367_v33 = vadd.f32 %v2993_v15, %v2831_v19 }
 0x121   : > { %v358_v17 = vpop.f32.mrf.mxu0  ;;  %v374_v18 = vpop.f32.mrf.mxu1 }
 0x122   : > { %v375_v22 = vadd.f32 %v2831_v19, %v374_v18  ;;  %v359_v25 = vadd.f32 %v2831_v19, %v358_v17 }
 0x123   : > { %v2994_v20 = vpop.f32.mrf.mxu0  ;;  %v2998_v21 = vpop.f32.mrf.mxu1 }
 0x124   : > { %v370_v29 = vadd.f32 %v2994_v20, %v2831_v19  ;;  %v386_v30 = vadd.f32 %v2998_v21, %v2831_v19 }
 0x125   : > { %v361_v23 = vpop.f32.mrf.mxu0  ;;  %v377_v24 = vpop.f32.mrf.mxu1 }
 0x126   : > { %v362_v26 = vadd.f32 %v2831_v19, %v361_v23  ;;  %v378_v27 = vadd.f32 %v2831_v19, %v377_v24  ;;  %v3818_v34 = vpack.c.bf16 %v370_v29, %v367_v33  ;;  %v3820_v35 = vpack.c.bf16 %v386_v30, %v383_v28 }
 0x128   : > { %v3812_v31 = vpack.c.bf16 %v362_v26, %v359_v25  ;;  %v3814_v32 = vpack.c.bf16 %v378_v27, %v375_v22 }
 0x12a   : > { %495 = vrot.lane.b32.xlu1 %v3814_v32, %s3614_s8  ;;  %394 = vrot.lane.b32.xlu0 %v3812_v31, %s3614_s8 }
 0x12e   : > { %545 = vrot.lane.b32.xlu1 %v3820_v35, %s3614_s8  ;;  %445 = vrot.lane.b32.xlu0 %v3818_v34, %s3614_s8  ;;  %s2725_s8 = sshll.u32 %s272_s26, 4  ;;  %s4315_s8 = int_to_ptr.vmem [resolvable:$true] %s2725_s8 }
 0x19c   : > { %v496_v36 = vpop.permute.xlu1 %495  ;;  %v395_v37 = vpop.permute.xlu0 %394 }
 0x19d   : > { %v501_v38 = vsel %vm396_vm2, %v496_v36, 0  ;;  %v401_v39 = vsel %vm396_vm2, %v395_v37, 0 }
 0x19e   : > { %3000 = vmatpush3.bf16.xpose.msra.mxu1 %v401_v39  ;;  %3012 = vmatpush3.bf16.xpose.msra.mxu0 %v501_v38 }
 0x19f   : > { %3005 = vmatprep.subr.bf16.mxu1 %v3612_v14  ;;  %3023 = vmatprep.subr.bf16.mxu0 %v3612_v14 }
 0x1a0   : > { %v446_v40 = vpop.permute.xlu0 %445  ;;  %v546_v42 = vpop.permute.xlu1 %545 }
 0x1a1   : > { %v451_v41 = vsel %vm396_vm2, %v446_v40, 0  ;;  %v551_v43 = vsel %vm396_vm2, %v546_v42, 0 }
 0x1a5   : > { %3002 = vmatmul.mubr.msk.bf16.vlgmr.msra.gmra.mxu1 %vm396_vm2, %v3812_v31  ;;  %3014 = vmatmul.mubr.msk.bf16.vlgmr.msra.gmra.mxu0 %vm396_vm2, %v3814_v32 }
 0x1a6   : > { %3006 = vmatpush3.bf16.xpose.msra.mxu1 %v451_v41  ;;  %3007 = vmatprep.mubr.msk.bf16.mxu1 %vm3613_vm1, %v3612_v14 }
 0x1a7   : > { %3017 = vmatprep.subr.bf16.mxu1 %v3612_v14  ;;  %3025 = vmatprep.mubr.msk.bf16.mxu0 %vm3613_vm1, %v3612_v14 }
 0x1ad   : > { %3008 = vmatmul.mubr.msk.bf16.vlgmr.msra.gmra.mxu1 %vm396_vm2, %v3818_v34 }
 0x1ae   : > { %3018 = vmatpush3.bf16.xpose.msra.mxu1 %v551_v43  ;;  %3019 = vmatprep.mubr.msk.bf16.mxu1 %vm3613_vm1, %v3612_v14 }
 0x1af   : > { %3029 = vmatprep.subr.bf16.mxu1 %v3612_v14 }
 0x1b5   : > { %3020 = vmatmul.mubr.msk.bf16.vlgmr.msra.gmra.mxu1 %vm396_vm2, %v3820_v35 }
 0x1b6   : > { %3031 = vmatprep.mubr.msk.bf16.mxu1 %vm3613_vm1, %v3612_v14 }
 0x265   : > { %v437_v44 = vpop.f32.mrf.mxu1  ;;  %v537_v45 = vpop.f32.mrf.mxu0 }
 0x266   : > { %v607_v46 = vsel %vm594_vm3, %v537_v45, -inf  ;;  %v595_v47 = vsel %vm594_vm3, %v437_v44, -inf }
 0x267   : > { %608 = vmax.xlane.f32.xlu1 %v607_v46  ;;  %v3015_v48 = vpop.f32.mrf.mxu0  ;;  %596 = vmax.xlane.f32.xlu0 %v595_v47  ;;  %v3003_v49 = vpop.f32.mrf.mxu1 }
 0x269   : > { %v440_v50 = vpop.f32.mrf.mxu1  ;;  %v540_v51 = vpop.f32.mrf.mxu0 }
 0x26a   : > { %v598_v52 = vsel %vm594_vm3, %v440_v50, -inf  ;;  %v610_v62 = vsel %vm594_vm3, %v540_v51, -inf }
 0x26b   : > { %v3016_v53 = vpop.f32.mrf.mxu0  ;;  %599 = vmax.xlane.f32.xlu1 %v598_v52  ;;  %v3004_v54 = vpop.f32.mrf.mxu1 }
 0x26d   : > { %v487_v55 = vpop.f32.mrf.mxu1 }
 0x26e   : > { %v601_v56 = vsel %vm594_vm3, %v487_v55, -inf }
 0x26f   : > { %602 = vmax.xlane.f32.xlu0 %v601_v56  ;;  %v3009_v57 = vpop.f32.mrf.mxu1 }
 0x271   : > { %v490_v58 = vpop.f32.mrf.mxu1 }
 0x272   : > { %v604_v59 = vsel %vm594_vm3, %v490_v58, -inf }
 0x273   : > { %605 = vmax.xlane.f32.xlu0 %v604_v59  ;;  %v3010_v60 = vpop.f32.mrf.mxu1 }
 0x275   : > { %v587_v61 = vpop.f32.mrf.mxu1 }
 0x276   : > { %v613_v63 = vsel %vm594_vm3, %v587_v61, -inf }
 0x277   : > { %611 = vmax.xlane.f32.xlu0 %v610_v62  ;;  %614 = vmax.xlane.f32.xlu1 %v613_v63  ;;  %v3021_v0 = vpop.f32.mrf.mxu1 }
 0x279   : > { %v590_v1 = vpop.f32.mrf.mxu1 }
 0x27a   : > { %v616_v2 = vsel %vm594_vm3, %v590_v1, -inf }
 0x27b   : > { %617 = vmax.xlane.f32.xlu0 %v616_v2  ;;  %v3022_v3 = vpop.f32.mrf.mxu1 }
 0x288   : > { %687 = vrot.lane.b32.xlu1 %v3812_v31, %s3615_s10 }
 0x2f0   : > { %v609_v4 = vpop.xlane.xlu1 %608  ;;  %v597_v5 = vpop.xlane.xlu0 %596 }
 0x2f1   : > { %v623_v6 = vsub.f32 %v537_v45, %v609_v4  ;;  %v619_v7 = vsub.f32 %v437_v44, %v597_v5 }
 0x2f3   : > { %v627_v8 = vmul.f32 1.442695, %v619_v7  ;;  %v635_v9 = vmul.f32 1.442695, %v623_v6 }
 0x2f4   : > { %v600_v10 = vpop.xlane.xlu1 %599 }
 0x2f5   : > { %v620_v11 = vsub.f32 %v440_v50, %v600_v10  ;;  %3327 = vpow2.f32 %v627_v8 }
 0x2f6   : > { %3329 = vpow2.f32 %v635_v9 }
 0x2f7   : > { %v629_v12 = vmul.f32 1.442695, %v620_v11 }
 0x2f8   : > { %v603_v13 = vpop.xlane.xlu0 %602 }
 0x2f9   : > { %3331 = vpow2.f32 %v629_v12  ;;  %v621_v15 = vsub.f32 %v487_v55, %v603_v13 }
 0x2fb   : > { %v631_v16 = vmul.f32 1.442695, %v621_v15 }
 0x2fc   : > { %v606_v17 = vpop.xlane.xlu0 %605 }
 0x2fd   : > { %3333 = vpow2.f32 %v631_v16  ;;  %v622_v18 = vsub.f32 %v490_v58, %v606_v17 }
 0x2ff   : > { %v633_v24 = vmul.f32 1.442695, %v622_v18 }
 0x300   : > { %v615_v19 = vpop.xlane.xlu1 %614  ;;  %v612_v20 = vpop.xlane.xlu0 %611 }
 0x301   : > { %v624_v21 = vsub.f32 %v540_v51, %v612_v20  ;;  %v625_v41 = vsub.f32 %v587_v61, %v615_v19 }
 0x302   : > { %v3328_v22 = vpop.eup %3327 }
 0x303   : > { %v637_v23 = vmul.f32 1.442695, %v624_v21  ;;  %v643_v26 = vsel %vm594_vm3, %v3328_v22, 0.0  ;;  %v3859_v27 = vpop.eup %3329  ;;  %v639_v42 = vmul.f32 1.442695, %v625_v41 }
 0x304   : > { %v688_v25 = vpop.permute.xlu1 %687  ;;  %644 = vadd.xlane.f32.xlu1 %v643_v26  ;;  %v655_v30 = vsel %vm594_vm3, %v3859_v27, 0.0  ;;  %v618_v43 = vpop.xlane.xlu0 %617 }
 0x305   : > { %3024 = vmatpush3.bf16.msra.mxu0 %v688_v25  ;;  %3335 = vpow2.f32 %v637_v23  ;;  %v626_v44 = vsub.f32 %v590_v1, %v618_v43 }
 0x306   : > { %v3332_v28 = vpop.eup %3331  ;;  %3035 = vmatprep.subr.bf16.mxu0 %v3612_v14  ;;  %3337 = vpow2.f32 %v633_v24 }
 0x307   : > { %v646_v29 = vsel %vm594_vm3, %v3332_v28, 0.0  ;;  %3339 = vpow2.f32 %v639_v42  ;;  %v641_v45 = vmul.f32 1.442695, %v626_v44 }
 0x308   : > { %647 = vadd.xlane.f32.xlu0 %v646_v29  ;;  %656 = vadd.xlane.f32.xlu1 %v655_v30 }
 0x309   : > { %3341 = vpow2.f32 %v641_v45 }
 0x30a   : > { %v3865_v33 = vpop.eup %3333 }
 0x30b   : > { %v649_v36 = vsel %vm594_vm3, %v3865_v33, 0.0 }
 0x30c   : > { %650 = vadd.xlane.f32.xlu1 %v649_v36 }
 0x312   : > { %v3336_v37 = vpop.eup %3335 }
 0x313   : > { %v658_v38 = vsel %vm594_vm3, %v3336_v37, 0.0  ;;  %v3870_v39 = vpop.eup %3337 }
 0x314   : > { %659 = vadd.xlane.f32.xlu0 %v658_v38  ;;  %v652_v40 = vsel %vm594_vm3, %v3870_v39, 0.0  ;;  %v3880_v46 = vpop.eup %3339 }
 0x315   : > { %v661_v47 = vsel %vm594_vm3, %v3880_v46, 0.0 }
 0x316   : > { %v3884_v48 = vpop.eup %3341 }
 0x317   : > { %v664_v49 = vsel %vm594_vm3, %v3884_v48, 0.0 }
 0x318   : > { %653 = vadd.xlane.f32.xlu0 %v652_v40 }
 0x31d   : > { %781 = vrot.lane.b32.xlu1 %v3814_v32, %s3615_s10 }
 0x321   : > { %828 = vrot.lane.b32.xlu1 %v3820_v35, %s3615_s10 }
 0x32e   : > { %734 = vrot.lane.b32.xlu0 %v3818_v34, %s3615_s10 }
 0x345   : > { %662 = vadd.xlane.f32.xlu1 %v661_v47 }
 0x34d   : > { %665 = vadd.xlane.f32.xlu0 %v664_v49 }
 0x356   : > { %933 = vrot.lane.b32.xlu1 %v3818_v34, %s3616_s11 }
 0x35a   : > { %984 = vrot.lane.b32.xlu1 %v3814_v32, %s3616_s11 }
 0x35e   : > { %1035 = vrot.lane.b32.xlu1 %v3820_v35, %s3616_s11 }
 0x362   : > { %1033 = vrot.lane.b32.xlu1 %v3820_v35, %s3617_s12 }
 0x363   : > { %882 = vrot.lane.b32.xlu0 %v3812_v31, %s3616_s11 }
 0x367   : > { %880 = vrot.lane.b32.xlu0 %v3812_v31, %s3617_s12 }
 0x36b   : > { %931 = vrot.lane.b32.xlu0 %v3818_v34, %s3617_s12 }
 0x36f   : > { %982 = vrot.lane.b32.xlu0 %v3814_v32, %s3617_s12  ;;  %s4313_s12 = scalar_lea.hbm %s4365_s5, %s2896_s17 }
 0x38d   : > { %v645_v50 = vpop.xlane.xlu1 %644 }
 0x38e   : > { %3343 = vrcp.f32 %v645_v50 }
 0x391   : > { %v648_v51 = vpop.xlane.xlu0 %647  ;;  %v657_v52 = vpop.xlane.xlu1 %656 }
 0x392   : > { %3345 = vrcp.f32 %v648_v51 }
 0x393   : > { %3347 = vrcp.f32 %v657_v52 }
 0x395   : > { %v651_v54 = vpop.xlane.xlu1 %650 }
 0x399   : > { %v782_v61 = vpop.permute.xlu1 %781 }
 0x39b   : > { %v3344_v53 = vpop.eup %3343 }
 0x39c   : > { %v675_v57 = vmul.f32 %v3344_v53, %v3328_v22 }
 0x39d   : > { %v660_v55 = vpop.xlane.xlu0 %659  ;;  %v829_v9 = vpop.permute.xlu1 %828 }
 0x39e   : > { %3349 = vrcp.f32 %v660_v55 }
 0x39f   : > { %v3346_v56 = vpop.eup %3345  ;;  %3351 = vrcp.f32 %v651_v54 }
 0x3a0   : > { %v676_v58 = vmul.f32 %v3346_v56, %v3332_v28  ;;  %v3348_v63 = vpop.eup %3347 }
 0x3a1   : > { %v654_v59 = vpop.xlane.xlu0 %653  ;;  %v679_v1 = vmul.f32 %v3348_v63, %v3859_v27 }
 0x3a2   : > { %v683_v60 = vpack.c.bf16 %v676_v58, %v675_v57  ;;  %3353 = vrcp.f32 %v654_v59 }
 0x3a4   : > { %3026 = vmatmul.mubr.msk.bf16.vlgmr.msra.gmra.mxu0 %vm594_vm3, %v683_v60 }
 0x3a5   : > { %3036 = vmatpush3.bf16.msra.mxu0 %v782_v61  ;;  %3037 = vmatprep.mubr.msk.bf16.mxu0 %vm3613_vm1, %v3612_v14  ;;  %v735_v62 = vpop.permute.xlu0 %734 }
 0x3a6   : > { %3047 = vmatprep.subr.bf16.mxu0 %v3612_v14  ;;  %3030 = vmatpush3.bf16.msra.mxu1 %v735_v62 }
 0x3a7   : > { %3041 = vmatprep.subr.bf16.mxu1 %v3612_v14 }
 0x3ab   : > { %v3350_v0 = vpop.eup %3349 }
 0x3ac   : > { %v680_v2 = vmul.f32 %v3350_v0, %v3336_v37  ;;  %v3352_v3 = vpop.eup %3351 }
 0x3ad   : > { %v677_v6 = vmul.f32 %v3352_v3, %v3865_v33 }
 0x3ae   : > { %v685_v4 = vpack.c.bf16 %v680_v2, %v679_v1 }
 0x3af   : > { %v3354_v5 = vpop.eup %3353 }
 0x3b0   : > { %3038 = vmatmul.mubr.msk.bf16.vlgmr.msra.gmra.mxu0 %vm594_vm3, %v685_v4  ;;  %v678_v7 = vmul.f32 %v3354_v5, %v3870_v39 }
 0x3b1   : > { %3049 = vmatprep.mubr.msk.bf16.mxu0 %vm3613_vm1, %v3612_v14 }
 0x3b2   : > { %v684_v8 = vpack.c.bf16 %v678_v7, %v677_v6 }
 0x3b4   : > { %3032 = vmatmul.mubr.msk.bf16.vlgmr.msra.gmra.mxu1 %vm594_vm3, %v684_v8 }
 0x3b5   : > { %3042 = vmatpush3.bf16.msra.mxu1 %v829_v9  ;;  %3043 = vmatprep.mubr.msk.bf16.mxu1 %vm3613_vm1, %v3612_v14 }
 0x3b6   : > { %3053 = vmatprep.subr.bf16.mxu1 %v3612_v14 }
 0x3ce   : > { %v663_v10 = vpop.xlane.xlu1 %662 }
 0x3cf   : > { %3355 = vrcp.f32 %v663_v10 }
 0x3d2   : > { %v934_v12 = vpop.permute.xlu1 %933 }
 0x3d3   : > { %v939_v25 = vsel %vm396_vm2, %v934_v12, 0 }
 0x3d6   : > { %v666_v11 = vpop.xlane.xlu0 %665  ;;  %v985_v17 = vpop.permute.xlu1 %984 }
 0x3d7   : > { %3357 = vrcp.f32 %v666_v11  ;;  %v990_v19 = vsel %vm396_vm2, %v985_v17, 0 }
 0x3da   : > { %v883_v13 = vpop.permute.xlu0 %882  ;;  %v1036_v27 = vpop.permute.xlu1 %1035 }
 0x3db   : > { %v888_v15 = vsel %vm396_vm2, %v883_v13, 0  ;;  %v1041_v28 = vsel %vm396_vm2, %v1036_v27, 0 }
 0x3dc   : > { %3048 = vmatpush3.bf16.xpose.msra.mxu0 %v888_v15  ;;  %v3356_v18 = vpop.eup %3355 }
 0x3dd   : > { %3059 = vmatprep.subr.bf16.mxu0 %v3612_v14  ;;  %v681_v22 = vmul.f32 %v3356_v18, %v3880_v46 }
 0x3de   : > { %v881_v16 = vpop.permute.xlu0 %880  ;;  %v1034_v29 = vpop.permute.xlu1 %1033 }
 0x3e2   : > { %v932_v21 = vpop.permute.xlu0 %931 }
 0x3e3   : > { %3050 = vmatmul.mubr.msk.bf16.vlgmr.msra.gmra.mxu0 %vm396_vm2, %v881_v16 }
 0x3e4   : > { %v3358_v20 = vpop.eup %3357  ;;  %3060 = vmatpush3.bf16.xpose.msra.mxu0 %v990_v19  ;;  %3061 = vmatprep.mubr.msk.bf16.mxu0 %vm3613_vm1, %v3612_v14 }
 0x3e5   : > { %v682_v23 = vmul.f32 %v3358_v20, %v3884_v48  ;;  %3071 = vmatprep.subr.bf16.mxu0 %v3612_v14 }
 0x3e6   : > { %v983_v26 = vpop.permute.xlu0 %982 }
 0x3e7   : > { %v686_v24 = vpack.c.bf16 %v682_v23, %v681_v22 }
 0x3e9   : > { %3044 = vmatmul.mubr.msk.bf16.vlgmr.msra.gmra.mxu1 %vm594_vm3, %v686_v24 }
 0x3ea   : > { %3054 = vmatpush3.bf16.xpose.msra.mxu1 %v939_v25  ;;  %3055 = vmatprep.mubr.msk.bf16.mxu1 %vm3613_vm1, %v3612_v14 }
 0x3eb   : > { %3062 = vmatmul.mubr.msk.bf16.vlgmr.msra.gmra.mxu0 %vm396_vm2, %v983_v26  ;;  %3065 = vmatprep.subr.bf16.mxu1 %v3612_v14 }
 0x3ec   : > { %3073 = vmatprep.mubr.msk.bf16.mxu0 %vm3613_vm1, %v3612_v14 }
 0x3f1   : > { %3056 = vmatmul.mubr.msk.bf16.vlgmr.msra.gmra.mxu1 %vm396_vm2, %v932_v21 }
 0x3f2   : > { %3066 = vmatpush3.bf16.xpose.msra.mxu1 %v1041_v28  ;;  %3067 = vmatprep.mubr.msk.bf16.mxu1 %vm3613_vm1, %v3612_v14 }
 0x3f3   : > { %3077 = vmatprep.subr.bf16.mxu1 %v3612_v14 }
 0x3f9   : > { %3068 = vmatmul.mubr.msk.bf16.vlgmr.msra.gmra.mxu1 %vm396_vm2, %v1034_v29 }
 0x3fa   : > { %3079 = vmatprep.mubr.msk.bf16.mxu1 %vm3613_vm1, %v3612_v14 }
 0x464   : > { %v3936_v30 = vpop.f32.mrf.mxu0 }
 0x466   : > { %v3027_v33 = vpop.f32.mrf.mxu0 }
 0x468   : > { %v3938_v36 = vpop.f32.mrf.mxu0 }
 0x469   : > { %v875_v37 = vpack.c.bf16 %v3938_v36, %v3936_v30 }
 0x46a   : > { %v3028_v38 = vpop.f32.mrf.mxu0 }
 0x470   : > { %v3942_v39 = vpop.f32.mrf.mxu0 }
 0x472   : > { %v3039_v40 = vpop.f32.mrf.mxu0 }
 0x474   : > { %v3944_v41 = vpop.f32.mrf.mxu1  ;;  %v3946_v42 = vpop.f32.mrf.mxu0 }
 0x475   : > { %v877_v43 = vpack.c.bf16 %v3946_v42, %v3942_v39  ;;  %v1369_v42 = vld [vmem:[#allocation7 + $0x4] sm:$0xf] }
 0x476   : > { %v3033_v44 = vpop.f32.mrf.mxu1  ;;  %v3040_v45 = vpop.f32.mrf.mxu0 }
 0x478   : > { %v3950_v46 = vpop.f32.mrf.mxu1 }
 0x479   : > { %v876_v47 = vpack.c.bf16 %v3950_v46, %v3944_v41 }
 0x47a   : > { %v3034_v48 = vpop.f32.mrf.mxu1 }
 0x4a3   : > { %v924_v49 = vpop.f32.mrf.mxu0 }
 0x4a4   : > { %v1084_v50 = vsel %vm594_vm3, %v924_v49, -inf }
 0x4a5   : > { %1085 = vmax.xlane.f32.xlu0 %v1084_v50  ;;  %v3051_v51 = vpop.f32.mrf.mxu0 }
 0x4a7   : > { %v927_v52 = vpop.f32.mrf.mxu0 }
 0x4a8   : > { %v1087_v53 = vsel %vm594_vm3, %v927_v52, -inf }
 0x4a9   : > { %v3956_v54 = vpop.f32.mrf.mxu1  ;;  %1088 = vmax.xlane.f32.xlu1 %v1087_v53  ;;  %v3052_v55 = vpop.f32.mrf.mxu0 }
 0x4ab   : > { %v3045_v56 = vpop.f32.mrf.mxu1  ;;  %v1026_v57 = vpop.f32.mrf.mxu0 }
 0x4ac   : > { %v1096_v58 = vsel %vm594_vm3, %v1026_v57, -inf }
 0x4ad   : > { %v3959_v59 = vpop.f32.mrf.mxu1  ;;  %1097 = vmax.xlane.f32.xlu1 %v1096_v58  ;;  %v3063_v60 = vpop.f32.mrf.mxu0 }
 0x4ae   : > { %v878_v61 = vpack.c.bf16 %v3959_v59, %v3956_v54 }
 0x4af   : > { %v3046_v62 = vpop.f32.mrf.mxu1  ;;  %v1029_v63 = vpop.f32.mrf.mxu0 }
 0x4b0   : > { %v1099_v9 = vsel %vm594_vm3, %v1029_v63, -inf }
 0x4b1   : > { %v975_v0 = vpop.f32.mrf.mxu1  ;;  %v3064_v1 = vpop.f32.mrf.mxu0 }
 0x4b2   : > { %v1090_v2 = vsel %vm594_vm3, %v975_v0, -inf }
 0x4b3   : > { %1091 = vmax.xlane.f32.xlu0 %v1090_v2  ;;  %v3057_v3 = vpop.f32.mrf.mxu1 }
 0x4b5   : > { %v978_v4 = vpop.f32.mrf.mxu1 }
 0x4b6   : > { %v1093_v5 = vsel %vm594_vm3, %v978_v4, -inf }
 0x4b7   : > { %1094 = vmax.xlane.f32.xlu0 %v1093_v5  ;;  %v3058_v6 = vpop.f32.mrf.mxu1 }
 0x4b9   : > { %v1077_v7 = vpop.f32.mrf.mxu1 }
 0x4ba   : > { %v1102_v8 = vsel %vm594_vm3, %v1077_v7, -inf }
 0x4bb   : > { %v3069_v10 = vpop.f32.mrf.mxu1  ;;  %1103 = vmax.xlane.f32.xlu1 %v1102_v8  ;;  %1100 = vmax.xlane.f32.xlu0 %v1099_v9 }
 0x4bd   : > { %v1080_v11 = vpop.f32.mrf.mxu1 }
 0x4be   : > { %v1105_v12 = vsel %vm594_vm3, %v1080_v11, -inf }
 0x4bf   : > { %v3070_v13 = vpop.f32.mrf.mxu1  ;;  %1106 = vmax.xlane.f32.xlu0 %v1105_v12 }
 0x4cc   : > { %1176 = vrot.lane.b32.xlu1 %v3812_v31, %s3618_s28 }
 0x52e   : > { %v1086_v15 = vpop.xlane.xlu0 %1085 }
 0x52f   : > { %v1108_v16 = vsub.f32 %v924_v49, %v1086_v15 }
 0x531   : > { %v1116_v17 = vmul.f32 1.442695, %v1108_v16 }
 0x532   : > { %v1089_v18 = vpop.xlane.xlu1 %1088 }
 0x533   : > { %3359 = vpow2.f32 %v1116_v17  ;;  %v1109_v19 = vsub.f32 %v927_v52, %v1089_v18 }
 0x535   : > { %v1118_v20 = vmul.f32 1.442695, %v1109_v19 }
 0x536   : > { %v1098_v21 = vpop.xlane.xlu1 %1097 }
 0x537   : > { %3361 = vpow2.f32 %v1118_v20  ;;  %v1112_v22 = vsub.f32 %v1026_v57, %v1098_v21 }
 0x539   : > { %v1124_v25 = vmul.f32 1.442695, %v1112_v22 }
 0x53c   : > { %v1092_v23 = vpop.xlane.xlu0 %1091 }
 0x53d   : > { %v1110_v24 = vsub.f32 %v975_v0, %v1092_v23 }
 0x53f   : > { %v1120_v26 = vmul.f32 1.442695, %v1110_v24 }
 0x540   : > { %v3970_v27 = vpop.eup %3359  ;;  %v1095_v28 = vpop.xlane.xlu0 %1094 }
 0x541   : > { %3363 = vpow2.f32 %v1120_v26  ;;  %v1111_v29 = vsub.f32 %v978_v4, %v1095_v28  ;;  %v1132_v33 = vsel %vm594_vm3, %v3970_v27, 0.0 }
 0x542   : > { %1133 = vadd.xlane.f32.xlu1 %v1132_v33  ;;  %3365 = vpow2.f32 %v1124_v25 }
 0x543   : > { %v1122_v38 = vmul.f32 1.442695, %v1111_v29 }
 0x544   : > { %v3362_v40 = vpop.eup %3361  ;;  %v1104_v44 = vpop.xlane.xlu1 %1103 }
 0x545   : > { %v1101_v45 = vpop.xlane.xlu0 %1100  ;;  %3367 = vpow2.f32 %v1122_v38  ;;  %v1114_v48 = vsub.f32 %v1077_v7, %v1104_v44  ;;  %v1135_v50 = vsel %vm594_vm3, %v3362_v40, 0.0  ;;  %v879_v38 = vld [vmem:[#allocation7] sm:$0xf] }
 0x546   : > { %v1113_v49 = vsub.f32 %v1029_v63, %v1101_v45  ;;  %1136 = vadd.xlane.f32.xlu0 %v1135_v50 }
 0x547   : > { %v1128_v51 = vmul.f32 1.442695, %v1114_v48 }
 0x548   : > { %v1126_v52 = vmul.f32 1.442695, %v1113_v49  ;;  %v1177_v53 = vpop.permute.xlu1 %1176 }
 0x549   : > { %v1107_v55 = vpop.xlane.xlu0 %1106  ;;  %3369 = vpow2.f32 %v1128_v51  ;;  %3072 = vmatpush3.bf16.msra.mxu0 %v1177_v53 }
 0x54a   : > { %v1115_v56 = vsub.f32 %v1080_v11, %v1107_v55  ;;  %3371 = vpow2.f32 %v1126_v52  ;;  %3083 = vmatprep.subr.bf16.mxu0 %v3612_v14  ;;  %v1464_v55 = vsel %vm1382_vm4, %v879_v38, 0 }
 0x54c   : > { %v1130_v57 = vmul.f32 1.442695, %v1115_v56 }
 0x54e   : > { %3373 = vpow2.f32 %v1130_v57  ;;  %v3364_v58 = vpop.eup %3363 }
 0x54f   : > { %v1138_v60 = vsel %vm594_vm3, %v3364_v58, 0.0  ;;  %v3977_v62 = vpop.eup %3365 }
 0x550   : > { %1139 = vadd.xlane.f32.xlu1 %v1138_v60  ;;  %v1144_v0 = vsel %vm594_vm3, %v3977_v62, 0.0 }
 0x552   : > { %v3368_v63 = vpop.eup %3367 }
 0x553   : > { %v1141_v1 = vsel %vm594_vm3, %v3368_v63, 0.0 }
 0x554   : > { %1145 = vadd.xlane.f32.xlu1 %v1144_v0  ;;  %1142 = vadd.xlane.f32.xlu0 %v1141_v1 }
 0x556   : > { %v3982_v2 = vpop.eup %3369 }
 0x557   : > { %v3372_v3 = vpop.eup %3371  ;;  %v1150_v4 = vsel %vm594_vm3, %v3982_v2, 0.0 }
 0x558   : > { %1151 = vadd.xlane.f32.xlu1 %v1150_v4  ;;  %v1147_v5 = vsel %vm594_vm3, %v3372_v3, 0.0 }
 0x559   : > { %1148 = vadd.xlane.f32.xlu0 %v1147_v5 }
 0x55b   : > { %v3987_v6 = vpop.eup %3373 }
 0x55c   : > { %v1153_v7 = vsel %vm594_vm3, %v3987_v6, 0.0 }
 0x55d   : > { %1154 = vadd.xlane.f32.xlu0 %v1153_v7 }
 0x569   : > { %1270 = vrot.lane.b32.xlu1 %v3814_v32, %s3618_s28 }
 0x56d   : > { %1317 = vrot.lane.b32.xlu1 %v3820_v35, %s3618_s28 }
 0x571   : > { %1584 = vrot.lane.b32.xlu1 %v3818_v34, %s3619_s6 }
 0x573   : > { %1223 = vrot.lane.b32.xlu0 %v3818_v34, %s3618_s28  ;;  %s3535_s28 = scalar_lea.vmem %s4315_s8, 1024 }
 0x574   : > { %p3536_p11 = scmp.ne.s32.totalorder %s4315_s8, %s3535_s28 }
 0x575   : > { %1635 = vrot.lane.b32.xlu1 %v3814_v32, %s3619_s6 }
 0x576   : > { %p3537_p1 = pnand %p3536_p11, %p4381_p10 }
 0x577   : > { %1533 = vrot.lane.b32.xlu0 %v3812_v31, %s3619_s6 }
 0x578   : > { %p3538_p2 = pneg %p3537_p1 }
 0x579   : > { %1686 = vrot.lane.b32.xlu1 %v3820_v35, %s3619_s6  ;;  %s3625_s6 = smov [#allocation8]  }
 0x57b   : > { %1531 = vrot.lane.b32.xlu0 %v3812_v31, %s3620_s7 }
 0x57d   : > { %1684 = vrot.lane.b32.xlu1 %v3820_v35, %s3620_s7 }
 0x57f   : > { %1582 = vrot.lane.b32.xlu0 %v3818_v34, %s3620_s7 }
 0x583   : > { %1633 = vrot.lane.b32.xlu0 %v3814_v32, %s3620_s7  ;;  %s3539_s7 = sshll.u32 %s3625_s6, 4  ;;  %s3540_s7 = int_to_ptr.vmem [resolvable:$false] %s3539_s7 }
 0x584   : > { %p3542_p6 = scmp.lt.s32.totalorder %s4315_s8, %s3540_s7 }
 0x5cb   : > { %v1134_v8 = vpop.xlane.xlu1 %1133 }
 0x5cc   : > { %3375 = vrcp.f32 %v1134_v8 }
 0x5cf   : > { %v1137_v9 = vpop.xlane.xlu0 %1136 }
 0x5d0   : > { %3377 = vrcp.f32 %v1137_v9 }
 0x5d9   : > { %v1140_v10 = vpop.xlane.xlu1 %1139  ;;  %v3376_v11 = vpop.eup %3375 }
 0x5da   : > { %3379 = vrcp.f32 %v1140_v10  ;;  %v1164_v16 = vmul.f32 %v3376_v11, %v3970_v27 }
 0x5dd   : > { %v3378_v12 = vpop.eup %3377  ;;  %v1146_v13 = vpop.xlane.xlu1 %1145 }
 0x5de   : > { %v1143_v15 = vpop.xlane.xlu0 %1142  ;;  %v1165_v17 = vmul.f32 %v3378_v12, %v3362_v40 }
 0x5df   : > { %3381 = vrcp.f32 %v1143_v15 }
 0x5e0   : > { %v1172_v18 = vpack.c.bf16 %v1165_v17, %v1164_v16  ;;  %3383 = vrcp.f32 %v1146_v13 }
 0x5e1   : > { %v1152_v19 = vpop.xlane.xlu1 %1151 }
 0x5e2   : > { %v1149_v20 = vpop.xlane.xlu0 %1148  ;;  %3074 = vmatmul.mubr.msk.bf16.vlgmr.msra.gmra.mxu0 %vm594_vm3, %v1172_v18 }
 0x5e3   : > { %3385 = vrcp.f32 %v1149_v20  ;;  %3085 = vmatprep.mubr.msk.bf16.mxu0 %vm3613_vm1, %v3612_v14 }
 0x5e4   : > { %3387 = vrcp.f32 %v1152_v19 }
 0x5e5   : > { %v1271_v21 = vpop.permute.xlu1 %1270 }
 0x5e6   : > { %v1155_v22 = vpop.xlane.xlu0 %1154  ;;  %3084 = vmatpush3.bf16.msra.mxu0 %v1271_v21 }
 0x5e7   : > { %3389 = vrcp.f32 %v1155_v22  ;;  %v3380_v23 = vpop.eup %3379  ;;  %3235 = vmatprep.subr.msk.bf16.mxu0 %vm1382_vm4, %v1369_v42 }
 0x5e8   : > { %v1166_v26 = vmul.f32 %v3380_v23, %v3364_v58 }
 0x5e9   : > { %v1318_v40 = vpop.permute.xlu1 %1317 }
 0x5ea   : > { %v1224_v24 = vpop.permute.xlu0 %1223 }
 0x5eb   : > { %3078 = vmatpush3.bf16.msra.mxu1 %v1224_v24 }
 0x5ec   : > { %v3382_v25 = vpop.eup %3381  ;;  %3089 = vmatprep.subr.bf16.mxu1 %v3612_v14 }
 0x5ed   : > { %v1167_v27 = vmul.f32 %v3382_v25, %v3368_v63  ;;  %v3384_v28 = vpop.eup %3383  ;;  %v1585_v56 = vpop.permute.xlu1 %1584 }
 0x5ee   : > { %v1168_v44 = vmul.f32 %v3384_v28, %v3977_v62  ;;  %v1590_v57 = vsel %vm396_vm2, %v1585_v56, 0  ;;  %v1534_v30 = vpop.permute.xlu0 %1533 }
 0x5ef   : > { %v1173_v29 = vpack.c.bf16 %v1167_v27, %v1166_v26  ;;  %v1539_v5 = vsel %vm396_vm2, %v1534_v30, 0 }
 0x5f0   : > { %v3386_v33 = vpop.eup %3385 }
 0x5f1   : > { %3080 = vmatmul.mubr.msk.bf16.vlgmr.msra.gmra.mxu1 %vm594_vm3, %v1173_v29  ;;  %v1169_v45 = vmul.f32 %v3386_v33, %v3372_v3  ;;  %v3388_v48 = vpop.eup %3387  ;;  %v1636_v36 = vpop.permute.xlu1 %1635 }
 0x5f2   : > { %3090 = vmatpush3.bf16.msra.mxu1 %v1318_v40  ;;  %3091 = vmatprep.mubr.msk.bf16.mxu1 %vm3613_vm1, %v3612_v14  ;;  %v1170_v51 = vmul.f32 %v3388_v48, %v3982_v2  ;;  %v1641_v19 = vsel %vm396_vm2, %v1636_v36, 0 }
 0x5f3   : > { %v1174_v49 = vpack.c.bf16 %v1169_v45, %v1168_v44  ;;  %3236 = vmatprep.subr.msk.bf16.mxu1 %vm1382_vm4, %v879_v38 }
 0x5f4   : > { %v3390_v50 = vpop.eup %3389 }
 0x5f5   : > { %3086 = vmatmul.mubr.msk.bf16.vlgmr.msra.gmra.mxu0 %vm594_vm3, %v1174_v49  ;;  %v1171_v52 = vmul.f32 %v3390_v50, %v3987_v6  ;;  %v1687_v41 = vpop.permute.xlu1 %1686 }
 0x5f7   : > { %v1175_v53 = vpack.c.bf16 %v1171_v52, %v1170_v51 }
 0x5f9   : > { %3092 = vmatmul.mubr.msk.bf16.vlgmr.msra.gmra.mxu1 %vm594_vm3, %v1175_v53  ;;  %v1685_v39 = vpop.permute.xlu1 %1684 }
 0x5fa   : > { %3107 = vmatprep.mubr.msk.bf16.mxu1 %vm396_vm2, %v875_v37  ;;  %3106 = vmatpush3.bf16.msra.mxu1 %v1464_v55  ;;  %v1532_v37 = vpop.permute.xlu0 %1531 }
 0x5fb   : > { %3121 = vmatprep.subr.bf16.mxu1 %v3612_v14 }
 0x5fe   : > { %v1583_v46 = vpop.permute.xlu0 %1582 }
 0x601   : > { %3108 = vmatmul.mubr.msk.bf16.vlgmr.msra.gmra.mxu1 %vm396_vm2, %v876_v47  ;;  %v1692_v47 = vsel %vm396_vm2, %v1687_v41, 0 }
 0x602   : > { %3122 = vmatpush3.bf16.xpose.msra.mxu1 %v1590_v57  ;;  %3111 = vmatprep.mubr.msk.bf16.mxu1 %vm396_vm2, %v877_v43  ;;  %v1384_v43 = vsel %vm1382_vm4, %v1369_v42, 0  ;;  %v1634_v23 = vpop.permute.xlu0 %1633 }
 0x603   : > { %3133 = vmatprep.subr.bf16.mxu1 %v3612_v14  ;;  %3096 = vmatpush3.bf16.msra.mxu0 %v1384_v43 }
 0x604   : > { %3115 = vmatprep.subr.bf16.mxu0 %v3612_v14 }
 0x609   : > { %3112 = vmatmul.mubr.msk.bf16.gmra.mxu1 %vm396_vm2, %v878_v61 }
 0x60a   : > { %3123 = vmatprep.mubr.msk.bf16.mxu1 %vm3613_vm1, %v3612_v14 }
 0x611   : > { %3124 = vmatmul.mubr.msk.bf16.vlgmr.msra.gmra.mxu1 %vm396_vm2, %v1583_v46 }
 0x612   : > { %3134 = vmatpush3.bf16.xpose.msra.mxu1 %v1692_v47  ;;  %3135 = vmatprep.mubr.msk.bf16.mxu1 %vm3613_vm1, %v3612_v14 }
 0x613   : > { %3145 = vmatprep.subr.bf16.mxu1 %v3612_v14 }
 0x619   : > { %3136 = vmatmul.mubr.msk.bf16.vlgmr.msra.gmra.mxu1 %vm396_vm2, %v1685_v39 }
 0x61a   : > { %3147 = vmatprep.mubr.msk.bf16.mxu1 %vm3613_vm1, %v3612_v14 }
 0x6a2   : > { %v1216_v54 = vpop.f32.mrf.mxu0 }
 0x6a4   : > { %v3075_v59 = vpop.f32.mrf.mxu0 }
 0x6a6   : > { %v1219_v61 = vpop.f32.mrf.mxu0 }
 0x6a7   : > { %v1364_v58 = vpack.c.bf16 %v1219_v61, %v1216_v54 }
 0x6a8   : > { %v3076_v60 = vpop.f32.mrf.mxu0 }
 0x6a9   : > { %3097 = vmatprep.mubr.msk.bf16.mxu0 %vm396_vm2, %v1364_v58 }
 0x6b1   : > { %v1263_v62 = vpop.f32.mrf.mxu1 }
 0x6b3   : > { %v3081_v63 = vpop.f32.mrf.mxu1 }
 0x6b5   : > { %v1266_v0 = vpop.f32.mrf.mxu1  ;;  %v1310_v1 = vpop.f32.mrf.mxu0 }
 0x6b6   : > { %v1365_v2 = vpack.c.bf16 %v1266_v0, %v1263_v62 }
 0x6b7   : > { %v3082_v3 = vpop.f32.mrf.mxu1  ;;  %v3087_v4 = vpop.f32.mrf.mxu0 }
 0x6b8   : > { %3098 = vmatmul.mubr.msk.bf16.vlgmr.msra.gmra.mxu0 %vm396_vm2, %v1365_v2 }
 0x6b9   : > { %3116 = vmatpush3.bf16.xpose.msra.mxu0 %v1539_v5  ;;  %v1313_v6 = vpop.f32.mrf.mxu0  ;;  %v1357_v7 = vpop.f32.mrf.mxu1 }
 0x6ba   : > { %v1366_v8 = vpack.c.bf16 %v1313_v6, %v1310_v1  ;;  %3127 = vmatprep.subr.bf16.mxu0 %v3612_v14 }
 0x6bb   : > { %v3088_v9 = vpop.f32.mrf.mxu0  ;;  %v3093_v10 = vpop.f32.mrf.mxu1 }
 0x6bc   : > { %3101 = vmatprep.mubr.msk.bf16.mxu0 %vm396_vm2, %v1366_v8 }
 0x6bd   : > { %v1360_v11 = vpop.f32.mrf.mxu1 }
 0x6be   : > { %v1367_v12 = vpack.c.bf16 %v1360_v11, %v1357_v7 }
 0x6bf   : > { %v3094_v13 = vpop.f32.mrf.mxu1 }
 0x6c0   : > { %3102 = vmatmul.mubr.msk.bf16.gmra.mxu0 %vm396_vm2, %v1367_v12 }
 0x6c1   : > { %v4058_v15 = vpop.f32.mrf.mxu1  ;;  %3117 = vmatprep.mubr.msk.bf16.mxu0 %vm3613_vm1, %v3612_v14 }
 0x6c3   : > { %v4062_v16 = vpop.f32.mrf.mxu1 }
 0x6c5   : > { %v4064_v17 = vpop.f32.mrf.mxu1 }
 0x6c7   : > { %v4066_v18 = vpop.f32.mrf.mxu1 }
 0x6c8   : > { %3118 = vmatmul.mubr.msk.bf16.vlgmr.msra.gmra.mxu0 %vm396_vm2, %v1532_v37 }
 0x6c9   : > { %3128 = vmatpush3.bf16.xpose.msra.mxu0 %v1641_v19  ;;  %v4070_v20 = vpop.f32.mrf.mxu1  ;;  %3129 = vmatprep.mubr.msk.bf16.mxu0 %vm3613_vm1, %v3612_v14 }
 0x6ca   : > { %3139 = vmatprep.subr.bf16.mxu0 %v3612_v14 }
 0x6cb   : > { %v4075_v21 = vpop.f32.mrf.mxu1 }
 0x6cd   : > { %v4077_v22 = vpop.f32.mrf.mxu1 }
 0x6cf   : > { %v4079_v24 = vpop.f32.mrf.mxu1 }
 0x6d0   : > { %3130 = vmatmul.mubr.msk.bf16.vlgmr.msra.gmra.mxu0 %vm396_vm2, %v1634_v23 }
 0x6d1   : > { %v1626_v25 = vpop.f32.mrf.mxu1  ;;  %3141 = vmatprep.mubr.msk.bf16.mxu0 %vm3613_vm1, %v3612_v14 }
 0x6d2   : > { %v1741_v37 = vsel %vm594_vm3, %v1626_v25, -inf }
 0x6d3   : > { %v3125_v26 = vpop.f32.mrf.mxu1 }
 0x6d5   : > { %v1629_v27 = vpop.f32.mrf.mxu1 }
 0x6d6   : > { %v1744_v47 = vsel %vm594_vm3, %v1629_v27, -inf }
 0x6d7   : > { %v3126_v28 = vpop.f32.mrf.mxu1 }
 0x6d9   : > { %v1728_v29 = vpop.f32.mrf.mxu1 }
 0x6da   : > { %v1753_v54 = vsel %vm594_vm3, %v1728_v29, -inf }
 0x6db   : > { %v3137_v33 = vpop.f32.mrf.mxu1 }
 0x6dd   : > { %v1731_v38 = vpop.f32.mrf.mxu1 }
 0x6de   : > { %v1756_v58 = vsel %vm594_vm3, %v1731_v38, -inf }
 0x6df   : > { %v3138_v40 = vpop.f32.mrf.mxu1 }
 0x778   : > { %v4084_v44 = vpop.f32.mrf.mxu0 }
 0x77a   : > { %v4086_v45 = vpop.f32.mrf.mxu0 }
 0x77c   : > { %v4088_v48 = vpop.f32.mrf.mxu0 }
 0x77e   : > { %v4090_v49 = vpop.f32.mrf.mxu0 }
 0x780   : > { %v4092_v50 = vpop.f32.mrf.mxu0 }
 0x782   : > { %v4094_v51 = vpop.f32.mrf.mxu0 }
 0x784   : > { %v4096_v52 = vpop.f32.mrf.mxu0 }
 0x786   : > { %v4098_v53 = vpop.f32.mrf.mxu0 }
 0x788   : > { %v4100_v55 = vpop.f32.mrf.mxu0 }
 0x789   : > { %v1735_v56 = vsel %vm594_vm3, %v4100_v55, -inf }
 0x78a   : > { %1736 = vmax.xlane.f32.xlu0 %v1735_v56  ;;  %v3119_v57 = vpop.f32.mrf.mxu0 }
 0x78c   : > { %v1578_v30 = vpop.f32.mrf.mxu0 }
 0x78d   : > { %v1738_v36 = vsel %vm594_vm3, %v1578_v30, -inf }
 0x78e   : > { %1739 = vmax.xlane.f32.xlu1 %v1738_v36  ;;  %v3120_v41 = vpop.f32.mrf.mxu0  ;;  %1742 = vmax.xlane.f32.xlu0 %v1741_v37 }
 0x790   : > { %v4106_v46 = vpop.f32.mrf.mxu0 }
 0x791   : > { %v1747_v39 = vsel %vm594_vm3, %v4106_v46, -inf }
 0x792   : > { %1745 = vmax.xlane.f32.xlu0 %v1744_v47  ;;  %1748 = vmax.xlane.f32.xlu1 %v1747_v39  ;;  %v3131_v42 = vpop.f32.mrf.mxu0 }
 0x794   : > { %v1680_v43 = vpop.f32.mrf.mxu0 }
 0x795   : > { %v1750_v59 = vsel %vm594_vm3, %v1680_v43, -inf }
 0x796   : > { %1754 = vmax.xlane.f32.xlu1 %v1753_v54  ;;  %1751 = vmax.xlane.f32.xlu0 %v1750_v59  ;;  %v3132_v61 = vpop.f32.mrf.mxu0 }
 0x79a   : > { %1757 = vmax.xlane.f32.xlu0 %v1756_v58 }
 0x813   : > { %v1737_v60 = vpop.xlane.xlu0 %1736 }
 0x814   : > { %v1759_v41 = vsub.f32 %v4100_v55, %v1737_v60 }
 0x816   : > { %v1767_v47 = vmul.f32 1.442695, %v1759_v41 }
 0x817   : > { %v1740_v62 = vpop.xlane.xlu1 %1739  ;;  %v1743_v63 = vpop.xlane.xlu0 %1742 }
 0x818   : > { %v1761_v0 = vsub.f32 %v1626_v25, %v1743_v63  ;;  %v1760_v9 = vsub.f32 %v1578_v30, %v1740_v62 }
 0x81a   : > { %v1771_v1 = vmul.f32 1.442695, %v1761_v0  ;;  %v1769_v13 = vmul.f32 1.442695, %v1760_v9 }
 0x81b   : > { %v1749_v2 = vpop.xlane.xlu1 %1748  ;;  %v1746_v3 = vpop.xlane.xlu0 %1745 }
 0x81c   : > { %v1762_v4 = vsub.f32 %v1629_v27, %v1746_v3  ;;  %3391 = vpow2.f32 %v1771_v1  ;;  %v1763_v39 = vsub.f32 %v4106_v46, %v1749_v2 }
 0x81e   : > { %v1773_v5 = vmul.f32 1.442695, %v1762_v4  ;;  %v1775_v42 = vmul.f32 1.442695, %v1763_v39 }
 0x81f   : > { %v1755_v6 = vpop.xlane.xlu1 %1754  ;;  %v1752_v7 = vpop.xlane.xlu0 %1751 }
 0x820   : > { %v1765_v8 = vsub.f32 %v1728_v29, %v1755_v6  ;;  %3393 = vpow2.f32 %v1773_v5  ;;  %v1764_v19 = vsub.f32 %v1680_v43, %v1752_v7 }
 0x822   : > { %v1779_v10 = vmul.f32 1.442695, %v1765_v8  ;;  %v1777_v26 = vmul.f32 1.442695, %v1764_v19 }
 0x823   : > { %v1758_v11 = vpop.xlane.xlu0 %1757 }
 0x824   : > { %3395 = vpow2.f32 %v1779_v10  ;;  %v1766_v12 = vsub.f32 %v1731_v38, %v1758_v11 }
 0x826   : > { %v1781_v23 = vmul.f32 1.442695, %v1766_v12 }
 0x828   : > { %3397 = vpow2.f32 %v1781_v23 }
 0x829   : > { %v4114_v25 = vpop.eup %3391  ;;  %3399 = vpow2.f32 %v1769_v13 }
 0x82a   : > { %v1789_v27 = vsel %vm594_vm3, %v4114_v25, 0.0  ;;  %3401 = vpow2.f32 %v1777_v26 }
 0x82b   : > { %1790 = vadd.xlane.f32.xlu1 %v1789_v27  ;;  %3403 = vpow2.f32 %v1767_v47 }
 0x82c   : > { %3405 = vpow2.f32 %v1775_v42 }
 0x82d   : > { %v3394_v28 = vpop.eup %3393 }
 0x82e   : > { %v1792_v29 = vsel %vm594_vm3, %v3394_v28, 0.0 }
 0x82f   : > { %1793 = vadd.xlane.f32.xlu0 %v1792_v29 }
 0x831   : > { %v4119_v33 = vpop.eup %3395 }
 0x832   : > { %v1801_v38 = vsel %vm594_vm3, %v4119_v33, 0.0 }
 0x833   : > { %1802 = vadd.xlane.f32.xlu1 %v1801_v38 }
 0x835   : > { %v4123_v40 = vpop.eup %3397 }
 0x836   : > { %v1804_v56 = vsel %vm594_vm3, %v4123_v40, 0.0  ;;  %v4127_v57 = vpop.eup %3399 }
 0x837   : > { %1805 = vadd.xlane.f32.xlu0 %v1804_v56  ;;  %v1786_v30 = vsel %vm594_vm3, %v4127_v57, 0.0  ;;  %v4131_v36 = vpop.eup %3401 }
 0x838   : > { %v1798_v37 = vsel %vm594_vm3, %v4131_v36, 0.0  ;;  %v3404_v43 = vpop.eup %3403 }
 0x839   : > { %v1783_v55 = vsel %vm594_vm3, %v3404_v43, 0.0  ;;  %v4144_v54 = vpop.eup %3405 }
 0x83a   : > { %v1795_v46 = vsel %vm594_vm3, %v4144_v54, 0.0 }
 0x83b   : > { %1787 = vadd.xlane.f32.xlu0 %v1786_v30 }
 0x83f   : > { %1799 = vadd.xlane.f32.xlu0 %v1798_v37 }
 0x844   : > { %1827 = vrot.lane.b32.xlu1 %v3812_v31, %s3621_s9 }
 0x855   : > { %1874 = vrot.lane.b32.xlu0 %v3818_v34, %s3621_s9 }
 0x859   : > { %2111 = vrot.lane.b32.xlu0 %v3812_v31, %s3622_s13 }
 0x85d   : > { %2162 = vrot.lane.b32.xlu0 %v3818_v34, %s3622_s13 }
 0x861   : > { %2160 = vrot.lane.b32.xlu0 %v3818_v34, %s3623_s14 }
 0x865   : > { %2211 = vrot.lane.b32.xlu0 %v3814_v32, %s3623_s14 }
 0x868   : > { %1784 = vadd.xlane.f32.xlu1 %v1783_v55 }
 0x86c   : > { %1796 = vadd.xlane.f32.xlu1 %v1795_v46  ;;  %v2020_v46 = vld [vmem:[#allocation7 + $0x8] sm:$0xf] }
 0x87d   : > { %1921 = vrot.lane.b32.xlu1 %v3814_v32, %s3621_s9 }
 0x881   : > { %1968 = vrot.lane.b32.xlu1 %v3820_v35, %s3621_s9  ;;  %s3541_s9 = scalar_lea.vmem %s3540_s7, 2048 }
 0x882   : > { %p3543_p12 = scmp.lt.s32.totalorder %s3541_s9, %s3535_s28 }
 0x884   : > { %p3544_p7 = por %p3543_p12, %p3542_p6 }
 0x885   : > { %2109 = vrot.lane.b32.xlu1 %v3812_v31, %s3623_s14 }
 0x886   : > { %p3545_p9 = pnand %p3544_p7, %p3538_p2 }
 0x889   : > { %2213 = vrot.lane.b32.xlu1 %v3814_v32, %s3622_s13 }
 0x88d   : > { %2264 = vrot.lane.b32.xlu1 %v3820_v35, %s3622_s13 }
 0x891   : > { %2262 = vrot.lane.b32.xlu1 %v3820_v35, %s3623_s14 }
 0x8b4   : > { %v1791_v59 = vpop.xlane.xlu1 %1790 }
 0x8b8   : > { %v1794_v61 = vpop.xlane.xlu0 %1793 }
 0x8b9   : > { %3407 = vrcp.f32 %v1794_v61 }
 0x8ba   : > { %3409 = vrcp.f32 %v1791_v59  ;;  %v2034_v59 = vsel %vm1382_vm4, %v2020_v46, 0 }
 0x8bc   : > { %v1803_v58 = vpop.xlane.xlu1 %1802 }
 0x8c0   : > { %v1828_v60 = vpop.permute.xlu1 %1827  ;;  %v1806_v62 = vpop.xlane.xlu0 %1805 }
 0x8c1   : > { %3140 = vmatpush3.bf16.msra.mxu0 %v1828_v60  ;;  %3411 = vrcp.f32 %v1806_v62 }
 0x8c2   : > { %3151 = vmatprep.subr.bf16.mxu0 %v3612_v14  ;;  %3413 = vrcp.f32 %v1803_v58 }
 0x8c4   : > { %v1788_v63 = vpop.xlane.xlu0 %1787 }
 0x8c5   : > { %3415 = vrcp.f32 %v1788_v63 }
 0x8c6   : > { %v3408_v0 = vpop.eup %3407 }
 0x8c7   : > { %v3410_v2 = vpop.eup %3409  ;;  %v1818_v3 = vmul.f32 %v3408_v0, %v3394_v28 }
 0x8c8   : > { %v1800_v1 = vpop.xlane.xlu0 %1799  ;;  %v1817_v5 = vmul.f32 %v3410_v2, %v4114_v25 }
 0x8ca   : > { %v1824_v6 = vpack.c.bf16 %v1818_v3, %v1817_v5 }
 0x8cc   : > { %v1875_v4 = vpop.permute.xlu0 %1874 }
 0x8cd   : > { %3146 = vmatpush3.bf16.msra.mxu1 %v1875_v4 }
 0x8ce   : > { %3157 = vmatprep.subr.bf16.mxu1 %v3612_v14  ;;  %v3412_v9 = vpop.eup %3411 }
 0x8cf   : > { %v3414_v11 = vpop.eup %3413  ;;  %v1822_v12 = vmul.f32 %v3412_v9, %v4123_v40 }
 0x8d0   : > { %3148 = vmatmul.mubr.msk.bf16.vlgmr.msra.gmra.mxu1 %vm594_vm3, %v1824_v6  ;;  %v1821_v23 = vmul.f32 %v3414_v11, %v4119_v33  ;;  %v2112_v25 = vpop.permute.xlu0 %2111 }
 0x8d1   : > { %3159 = vmatprep.mubr.msk.bf16.mxu1 %vm3613_vm1, %v3612_v14  ;;  %v2117_v38 = vsel %vm396_vm2, %v2112_v25, 0 }
 0x8d2   : > { %v3416_v13 = vpop.eup %3415  ;;  %v1826_v27 = vpack.c.bf16 %v1822_v12, %v1821_v23 }
 0x8d3   : > { %v1816_v29 = vmul.f32 %v3416_v13, %v4127_v57 }
 0x8d4   : > { %v2163_v57 = vpop.permute.xlu0 %2162 }
 0x8d5   : > { %v2168_v39 = vsel %vm396_vm2, %v2163_v57, 0 }
 0x8d8   : > { %v2161_v55 = vpop.permute.xlu0 %2160 }
 0x8f1   : > { %v1785_v7 = vpop.xlane.xlu1 %1784 }
 0x8f2   : > { %3417 = vrcp.f32 %v1785_v7 }
 0x8f5   : > { %v1797_v8 = vpop.xlane.xlu1 %1796 }
 0x8f6   : > { %3419 = vrcp.f32 %v1797_v8 }
 0x8f7   : > { %3421 = vrcp.f32 %v1800_v1 }
 0x8f9   : > { %v1922_v10 = vpop.permute.xlu1 %1921 }
 0x8fd   : > { %v1969_v19 = vpop.permute.xlu1 %1968 }
 0x8fe   : > { %3158 = vmatpush3.bf16.msra.mxu1 %v1969_v19 }
 0x8ff   : > { %v3418_v26 = vpop.eup %3417  ;;  %3173 = vmatprep.subr.bf16.mxu1 %v3612_v14 }
 0x900   : > { %v1815_v28 = vmul.f32 %v3418_v26, %v3404_v43 }
 0x901   : > { %3160 = vmatmul.mubr.msk.bf16.vlgmr.msra.gmra.mxu1 %vm594_vm3, %v1826_v27  ;;  %v2110_v56 = vpop.permute.xlu1 %2109 }
 0x902   : > { %3174 = vmatpush3.bf16.xpose.msra.mxu1 %v2117_v38  ;;  %v1823_v40 = vpack.c.bf16 %v1816_v29, %v1815_v28  ;;  %3175 = vmatprep.mubr.msk.bf16.mxu1 %vm3613_vm1, %v3612_v14 }
 0x903   : > { %v3420_v33 = vpop.eup %3419  ;;  %3179 = vmatprep.subr.bf16.mxu1 %v3612_v14 }
 0x904   : > { %3142 = vmatmul.mubr.msk.bf16.vlgmr.msra.gmra.mxu0 %vm594_vm3, %v1823_v40  ;;  %v3422_v30 = vpop.eup %3421  ;;  %v1819_v37 = vmul.f32 %v3420_v33, %v4144_v54 }
 0x905   : > { %3152 = vmatpush3.bf16.msra.mxu0 %v1922_v10  ;;  %3153 = vmatprep.mubr.msk.bf16.mxu0 %vm3613_vm1, %v3612_v14  ;;  %v2214_v41 = vpop.permute.xlu1 %2213  ;;  %v1820_v47 = vmul.f32 %v3422_v30, %v4131_v36 }
 0x906   : > { %3237 = vmatprep.subr.msk.bf16.mxu0 %vm1382_vm4, %v2020_v46  ;;  %v2219_v12 = vsel %vm396_vm2, %v2214_v41, 0 }
 0x907   : > { %v1825_v42 = vpack.c.bf16 %v1820_v47, %v1819_v37  ;;  %v2212_v47 = vpop.permute.xlu0 %2211 }
 0x909   : > { %3176 = vmatmul.mubr.msk.bf16.vlgmr.msra.gmra.mxu1 %vm396_vm2, %v2110_v56  ;;  %v2265_v43 = vpop.permute.xlu1 %2264 }
 0x90a   : > { %3180 = vmatpush3.bf16.xpose.msra.mxu1 %v2168_v39  ;;  %3181 = vmatprep.mubr.msk.bf16.mxu1 %vm3613_vm1, %v3612_v14  ;;  %v2270_v54 = vsel %vm396_vm2, %v2265_v43, 0 }
 0x90b   : > { %3191 = vmatprep.subr.bf16.mxu1 %v3612_v14 }
 0x90c   : > { %3154 = vmatmul.mubr.msk.bf16.vlgmr.msra.gmra.mxu0 %vm594_vm3, %v1825_v42 }
 0x90d   : > { %v2263_v36 = vpop.permute.xlu1 %2262  ;;  %3164 = vmatpush3.bf16.msra.mxu0 %v2034_v59  ;;  %v1501_v59 = vadd.f32 %v4062_v16, %v4086_v45 }
 0x90e   : > { %3185 = vmatprep.subr.bf16.mxu0 %v3612_v14 }
 0x911   : > { %3182 = vmatmul.mubr.msk.bf16.vlgmr.msra.gmra.mxu1 %vm396_vm2, %v2161_v55 }
 0x912   : > { %3192 = vmatpush3.bf16.xpose.msra.mxu1 %v2270_v54  ;;  %3193 = vmatprep.mubr.msk.bf16.mxu1 %vm3613_vm1, %v3612_v14  ;;  %v1509_v54 = vadd.f32 %v4058_v15, %v4084_v44  ;;  %v1504_v15 = vadd.f32 %v4066_v18, %v4090_v49 }
 0x913   : > { %3203 = vmatprep.subr.bf16.mxu1 %v3612_v14 }
 0x919   : > { %3194 = vmatmul.mubr.msk.bf16.vlgmr.msra.gmra.mxu1 %vm396_vm2, %v2263_v36 }
 0x91a   : > { %3205 = vmatprep.mubr.msk.bf16.mxu1 %vm3613_vm1, %v3612_v14 }
 0x990   : > { %v1914_v61 = vpop.f32.mrf.mxu1 }
 0x992   : > { %v3149_v58 = vpop.f32.mrf.mxu1 }
 0x994   : > { %v1917_v60 = vpop.f32.mrf.mxu1 }
 0x995   : > { %v2016_v8 = vpack.c.bf16 %v1917_v60, %v1914_v61 }
 0x996   : > { %v3150_v62 = vpop.f32.mrf.mxu1 }
 0x9c1   : > { %v2008_v63 = vpop.f32.mrf.mxu1 }
 0x9c3   : > { %v3161_v0 = vpop.f32.mrf.mxu1 }
 0x9c4   : > { %v1867_v1 = vpop.f32.mrf.mxu0 }
 0x9c5   : > { %v2011_v2 = vpop.f32.mrf.mxu1 }
 0x9c6   : > { %v3143_v3 = vpop.f32.mrf.mxu0  ;;  %v2018_v38 = vpack.c.bf16 %v2011_v2, %v2008_v63  ;;  %v1512_v63 = vadd.f32 %v4064_v17, %v4088_v48  ;;  %v1517_v17 = vadd.f32 %v4075_v21, %v4094_v51 }
 0x9c7   : > { %v3162_v4 = vpop.f32.mrf.mxu1 }
 0x9c8   : > { %v1870_v5 = vpop.f32.mrf.mxu0 }
 0x9c9   : > { %v2015_v6 = vpack.c.bf16 %v1870_v5, %v1867_v1  ;;  %v2153_v7 = vpop.f32.mrf.mxu1  ;;  %v1525_v5 = vadd.f32 %v4070_v20, %v4092_v50  ;;  %v1520_v50 = vadd.f32 %v4079_v24, %v4098_v53 }
 0x9ca   : > { %v3144_v9 = vpop.f32.mrf.mxu0  ;;  %v2313_v10 = vsel %vm594_vm3, %v2153_v7, -inf }
 0x9cb   : > { %3165 = vmatprep.mubr.msk.bf16.mxu0 %vm396_vm2, %v2015_v6  ;;  %2314 = vmax.xlane.f32.xlu0 %v2313_v10  ;;  %v3177_v11 = vpop.f32.mrf.mxu1  ;;  %v1528_v10 = vadd.f32 %v4077_v22, %v4096_v52 }
 0x9cc   : > { %v1961_v13 = vpop.f32.mrf.mxu0  ;;  %3166 = vmatmul.mubr.msk.bf16.vlgmr.msra.gmra.mxu0 %vm396_vm2, %v2016_v8 }
 0x9cd   : > { %3186 = vmatpush3.bf16.xpose.msra.mxu0 %v2219_v12  ;;  %v2156_v19 = vpop.f32.mrf.mxu1 }
 0x9ce   : > { %v3155_v23 = vpop.f32.mrf.mxu0  ;;  %v2316_v25 = vsel %vm594_vm3, %v2156_v19, -inf  ;;  %3197 = vmatprep.subr.bf16.mxu0 %v3612_v14 }
 0x9cf   : > { %2317 = vmax.xlane.f32.xlu1 %v2316_v25  ;;  %v3178_v26 = vpop.f32.mrf.mxu1 }
 0x9d0   : > { %v1964_v27 = vpop.f32.mrf.mxu0 }
 0x9d1   : > { %v2017_v28 = vpack.c.bf16 %v1964_v27, %v1961_v13  ;;  %v2204_v29 = vpop.f32.mrf.mxu1 }
 0x9d2   : > { %v3156_v56 = vpop.f32.mrf.mxu0  ;;  %v2319_v40 = vsel %vm594_vm3, %v2204_v29, -inf }
 0x9d3   : > { %3169 = vmatprep.mubr.msk.bf16.mxu0 %vm396_vm2, %v2017_v28  ;;  %2320 = vmax.xlane.f32.xlu0 %v2319_v40  ;;  %v3183_v33 = vpop.f32.mrf.mxu1 }
 0x9d4   : > { %3170 = vmatmul.mubr.msk.bf16.gmra.mxu0 %vm396_vm2, %v2018_v38 }
 0x9d5   : > { %v2207_v30 = vpop.f32.mrf.mxu1  ;;  %3187 = vmatprep.mubr.msk.bf16.mxu0 %vm3613_vm1, %v3612_v14 }
 0x9d6   : > { %v2322_v57 = vsel %vm594_vm3, %v2207_v30, -inf }
 0x9d7   : > { %2323 = vmax.xlane.f32.xlu0 %v2322_v57  ;;  %v3184_v37 = vpop.f32.mrf.mxu1 }
 0x9d9   : > { %v4203_v41 = vpop.f32.mrf.mxu1 }
 0x9da   : > { %v2331_v25 = vsel %vm594_vm3, %v4203_v41, -inf }
 0x9db   : > { %v3195_v39 = vpop.f32.mrf.mxu1 }
 0x9dc   : > { %3188 = vmatmul.mubr.msk.bf16.vlgmr.msra.gmra.mxu0 %vm396_vm2, %v2212_v47 }
 0x9dd   : > { %v4206_v42 = vpop.f32.mrf.mxu1  ;;  %3199 = vmatprep.mubr.msk.bf16.mxu0 %vm3613_vm1, %v3612_v14 }
 0x9de   : > { %v2334_v28 = vsel %vm594_vm3, %v4206_v42, -inf }
 0x9df   : > { %v3196_v43 = vpop.f32.mrf.mxu1 }
 0xa54   : > { %v2315_v55 = vpop.xlane.xlu0 %2314 }
 0xa55   : > { %v2337_v61 = vsub.f32 %v2153_v7, %v2315_v55 }
 0xa57   : > { %v2345_v44 = vmul.f32 1.442695, %v2337_v61 }
 0xa58   : > { %v2318_v58 = vpop.xlane.xlu1 %2317 }
 0xa59   : > { %v2338_v1 = vsub.f32 %v2156_v19, %v2318_v58  ;;  %3423 = vpow2.f32 %v2345_v44 }
 0xa5b   : > { %v2347_v48 = vmul.f32 1.442695, %v2338_v1 }
 0xa5c   : > { %v2321_v36 = vpop.xlane.xlu0 %2320 }
 0xa5d   : > { %v2339_v3 = vsub.f32 %v2204_v29, %v2321_v36  ;;  %3425 = vpow2.f32 %v2347_v48 }
 0xa5f   : > { %v2349_v8 = vmul.f32 1.442695, %v2339_v3 }
 0xa60   : > { %v2324_v16 = vpop.xlane.xlu0 %2323 }
 0xa61   : > { %v2340_v9 = vsub.f32 %v2207_v30, %v2324_v16  ;;  %3427 = vpow2.f32 %v2349_v8 }
 0xa63   : > { %v2351_v21 = vmul.f32 1.442695, %v2340_v9 }
 0xa65   : > { %3429 = vpow2.f32 %v2351_v21 }
 0xa66   : > { %v4246_v24 = vpop.eup %3423 }
 0xa67   : > { %v2361_v29 = vsel %vm594_vm3, %v4246_v24, 0.0 }
 0xa6a   : > { %v3426_v27 = vpop.eup %3425 }
 0xa6b   : > { %v2364_v56 = vsel %vm594_vm3, %v3426_v27, 0.0 }
 0xa6e   : > { %v4252_v38 = vpop.eup %3427 }
 0xa6f   : > { %v2367_v40 = vsel %vm594_vm3, %v4252_v38, 0.0 }
 0xa72   : > { %v3430_v33 = vpop.eup %3429 }
 0xa73   : > { %v2370_v30 = vsel %vm594_vm3, %v3430_v33, 0.0 }
 0xa8c   : > { %v3167_v46 = vpop.f32.mrf.mxu0 }
 0xa8d   : > { %v4214_v60 = vadd.f32 %v3167_v46, %v1509_v54 }
 0xa8e   : > { %v2070_v62 = vpop.f32.mrf.mxu0 }
 0xa8f   : > { %v4218_v0 = vadd.f32 %v2070_v62, %v1501_v59 }
 0xa90   : > { %v3168_v2 = vpop.f32.mrf.mxu0 }
 0xa91   : > { %v4222_v4 = vadd.f32 %v3168_v2, %v1512_v63 }
 0xa92   : > { %v2073_v45 = vpop.f32.mrf.mxu0 }
 0xa93   : > { %v4226_v6 = vadd.f32 %v2073_v45, %v1504_v15 }
 0xa94   : > { %v3171_v7 = vpop.f32.mrf.mxu0 }
 0xa95   : > { %v4230_v18 = vadd.f32 %v3171_v7, %v1525_v5 }
 0xa96   : > { %v2086_v49 = vpop.f32.mrf.mxu0 }
 0xa97   : > { %v4234_v11 = vadd.f32 %v2086_v49, %v1517_v17 }
 0xa98   : > { %v3172_v20 = vpop.f32.mrf.mxu0 }
 0xa99   : > { %v4238_v51 = vadd.f32 %v3172_v20, %v1528_v10 }
 0xa9a   : > { %v2089_v12 = vpop.f32.mrf.mxu0 }
 0xa9b   : > { %v4240_v13 = vadd.f32 %v2089_v12, %v1520_v50 }
 0xa9c   : > { %v2255_v19 = vpop.f32.mrf.mxu0 }
 0xa9d   : > { %v2325_v23 = vsel %vm594_vm3, %v2255_v19, -inf }
 0xa9e   : > { %2326 = vmax.xlane.f32.xlu1 %v2325_v23  ;;  %v3189_v22 = vpop.f32.mrf.mxu0 }
 0xaa0   : > { %v2258_v52 = vpop.f32.mrf.mxu0 }
 0xaa1   : > { %v2328_v26 = vsel %vm594_vm3, %v2258_v52, -inf }
 0xaa2   : > { %2332 = vmax.xlane.f32.xlu1 %v2331_v25  ;;  %2329 = vmax.xlane.f32.xlu0 %v2328_v26  ;;  %v3190_v53 = vpop.f32.mrf.mxu0 }
 0xaa6   : > { %2335 = vmax.xlane.f32.xlu0 %v2334_v28  ;;  %2362 = vadd.xlane.f32.xlu1 %v2361_v29 }
 0xaaa   : > { %2365 = vadd.xlane.f32.xlu0 %v2364_v56  ;;  %2368 = vadd.xlane.f32.xlu1 %v2367_v40  ;;  %v2598_v56 = vld [vmem:[#allocation7 + $0xc] sm:$0xf] }
 0xaab   : > { %v2612_v40 = vsel %vm1382_vm4, %v2598_v56, 0 }
 0xaae   : > { %2371 = vadd.xlane.f32.xlu0 %v2370_v30 }
 0xb27   : > { %v2327_v57 = vpop.xlane.xlu1 %2326 }
 0xb2b   : > { %v2333_v37 = vpop.xlane.xlu1 %2332  ;;  %v2330_v47 = vpop.xlane.xlu0 %2329 }
 0xb2c   : > { %v2343_v39 = vsub.f32 %v4203_v41, %v2333_v37  ;;  %v2342_v55 = vsub.f32 %v2258_v52, %v2330_v47 }
 0xb2e   : > { %v2357_v43 = vmul.f32 1.442695, %v2343_v39  ;;  %v2355_v46 = vmul.f32 1.442695, %v2342_v55 }
 0xb2f   : > { %v2336_v54 = vpop.xlane.xlu0 %2335  ;;  %v2363_v16 = vpop.xlane.xlu1 %2362 }
 0xb30   : > { %3431 = vpow2.f32 %v2357_v43  ;;  %v2344_v36 = vsub.f32 %v4206_v42, %v2336_v54  ;;  %v2341_v42 = vsub.f32 %v2255_v19, %v2327_v57 }
 0xb32   : > { %v2359_v59 = vmul.f32 1.442695, %v2344_v36  ;;  %v2353_v2 = vmul.f32 1.442695, %v2341_v42 }
 0xb33   : > { %v2366_v3 = vpop.xlane.xlu0 %2365  ;;  %v2369_v5 = vpop.xlane.xlu1 %2368 }
 0xb34   : > { %3433 = vpow2.f32 %v2359_v59 }
 0xb35   : > { %3435 = vpow2.f32 %v2355_v46 }
 0xb36   : > { %3437 = vpow2.f32 %v2353_v2 }
 0xb37   : > { %3439 = vrcp.f32 %v2366_v3  ;;  %v2372_v45 = vpop.xlane.xlu0 %2371 }
 0xb38   : > { %3441 = vrcp.f32 %v2363_v16 }
 0xb39   : > { %3443 = vrcp.f32 %v2372_v45 }
 0xb3a   : > { %3445 = vrcp.f32 %v2369_v5 }
 0xb3d   : > { %v3432_v61 = vpop.eup %3431 }
 0xb3e   : > { %v2379_v58 = vsel %vm594_vm3, %v3432_v61, 0.0 }
 0xb3f   : > { %2380 = vadd.xlane.f32.xlu1 %v2379_v58 }
 0xb41   : > { %v3434_v62 = vpop.eup %3433 }
 0xb42   : > { %v2382_v63 = vsel %vm594_vm3, %v3434_v62, 0.0  ;;  %v4262_v1 = vpop.eup %3435 }
 0xb43   : > { %2383 = vadd.xlane.f32.xlu0 %v2382_v63  ;;  %v2376_v41 = vsel %vm594_vm3, %v4262_v1, 0.0  ;;  %v3438_v15 = vpop.eup %3437 }
 0xb44   : > { %v2373_v44 = vsel %vm594_vm3, %v3438_v15, 0.0 }
 0xb47   : > { %2377 = vadd.xlane.f32.xlu0 %v2376_v41 }
 0xb50   : > { %2405 = vrot.lane.b32.xlu1 %v3812_v31, %s3624_s29  ;;  %v3440_v31 = vpop.eup %3439 }
 0xb51   : > { %v3442_v17 = vpop.eup %3441  ;;  %v2394_v48 = vmul.f32 %v3440_v31, %v3426_v27 }
 0xb52   : > { %v2393_v9 = vmul.f32 %v3442_v17, %v4246_v24 }
 0xb5d   : > { %2452 = vrot.lane.b32.xlu0 %v3818_v34, %s3624_s29 }
 0xb74   : > { %2374 = vadd.xlane.f32.xlu1 %v2373_v44  ;;  %v2886_v44 = vld [vmem:[%s4364_s4] ss:$0 sm:$0xff] }
 0xb85   : > { %2499 = vrot.lane.b32.xlu1 %v3814_v32, %s3624_s29  ;;  %v2401_v32 = vpack.c.bf16 %v2394_v48, %v2393_v9 }
 0xb89   : > { %2546 = vrot.lane.b32.xlu1 %v3820_v35, %s3624_s29  ;;  %v3444_v35 = vpop.eup %3443 }
 0xb8a   : > { %v3446_v10 = vpop.eup %3445  ;;  %v2396_v20 = vmul.f32 %v3444_v35, %v3430_v33 }
 0xb8b   : > { %v2395_v21 = vmul.f32 %v3446_v10, %v4252_v38 }
 0xb8d   : > { %v2402_v12 = vpack.c.bf16 %v2396_v20, %v2395_v21 }
 0xbc8   : > { %v2381_v34 = vpop.xlane.xlu1 %2380 }
 0xbcc   : > { %v2406_v7 = vpop.permute.xlu1 %2405  ;;  %v2384_v8 = vpop.xlane.xlu0 %2383 }
 0xbcd   : > { %3198 = vmatpush3.bf16.msra.mxu0 %v2406_v7  ;;  %3447 = vrcp.f32 %v2384_v8 }
 0xbce   : > { %3209 = vmatprep.subr.bf16.mxu0 %v3612_v14  ;;  %3449 = vrcp.f32 %v2381_v34 }
 0xbd0   : > { %3200 = vmatmul.mubr.msk.bf16.vlgmr.msra.gmra.mxu0 %vm594_vm3, %v2401_v32  ;;  %v2378_v49 = vpop.xlane.xlu0 %2377 }
 0xbd1   : > { %3211 = vmatprep.mubr.msk.bf16.mxu0 %vm3613_vm1, %v3612_v14  ;;  %3451 = vrcp.f32 %v2378_v49 }
 0xbd4   : > { %v2453_v50 = vpop.permute.xlu0 %2452 }
 0xbd5   : > { %3204 = vmatpush3.bf16.msra.mxu1 %v2453_v50 }
 0xbd6   : > { %3215 = vmatprep.subr.bf16.mxu1 %v3612_v14 }
 0xbd8   : > { %3206 = vmatmul.mubr.msk.bf16.vlgmr.msra.gmra.mxu1 %vm594_vm3, %v2402_v12 }
 0xbd9   : > { %3217 = vmatprep.mubr.msk.bf16.mxu1 %vm3613_vm1, %v3612_v14 }
 0xbda   : > { %v3448_v23 = vpop.eup %3447 }
 0xbdb   : > { %v3450_v52 = vpop.eup %3449  ;;  %v2400_v25 = vmul.f32 %v3448_v23, %v3434_v62 }
 0xbdc   : > { %v2399_v24 = vmul.f32 %v3450_v52, %v3432_v61 }
 0xbde   : > { %v2404_v53 = vpack.c.bf16 %v2400_v25, %v2399_v24  ;;  %v3452_v27 = vpop.eup %3451 }
 0xbdf   : > { %v2398_v14 = vmul.f32 %v3452_v27, %v4262_v1 }
 0xbfd   : > { %v2375_v19 = vpop.xlane.xlu1 %2374 }
 0xbfe   : > { %3453 = vrcp.f32 %v2375_v19 }
 0xc01   : > { %v2500_v22 = vpop.permute.xlu1 %2499 }
 0xc02   : > { %3210 = vmatpush3.bf16.msra.mxu0 %v2500_v22 }
 0xc03   : > { %3238 = vmatprep.subr.msk.bf16.mxu0 %vm1382_vm4, %v2598_v56 }
 0xc05   : > { %v2547_v26 = vpop.permute.xlu1 %2546 }
 0xc06   : > { %3216 = vmatpush3.bf16.msra.mxu1 %v2547_v26 }
 0xc09   : > { %3218 = vmatmul.mubr.msk.bf16.vlgmr.msra.gmra.mxu1 %vm594_vm3, %v2404_v53 }
 0xc0b   : > { %v3454_v28 = vpop.eup %3453 }
 0xc0c   : > { %v2397_v29 = vmul.f32 %v3454_v28, %v3438_v15 }
 0xc0e   : > { %v2403_v38 = vpack.c.bf16 %v2398_v14, %v2397_v29 }
 0xc10   : > { %3212 = vmatmul.mubr.msk.bf16.vlgmr.msra.gmra.mxu0 %vm594_vm3, %v2403_v38 }
 0xc11   : > { %3222 = vmatpush3.bf16.msra.mxu0 %v2612_v40 }
 0xc90   : > { %v2445_v33 = vpop.f32.mrf.mxu0 }
 0xc92   : > { %v3201_v30 = vpop.f32.mrf.mxu0 }
 0xc94   : > { %v2448_v57 = vpop.f32.mrf.mxu0 }
 0xc95   : > { %v2593_v37 = vpack.c.bf16 %v2448_v57, %v2445_v33 }
 0xc96   : > { %v3202_v47 = vpop.f32.mrf.mxu0 }
 0xc97   : > { %3223 = vmatprep.mubr.msk.bf16.mxu0 %vm396_vm2, %v2593_v37 }
 0xc98   : > { %v2492_v39 = vpop.f32.mrf.mxu1 }
 0xc9a   : > { %v3207_v43 = vpop.f32.mrf.mxu1 }
 0xc9c   : > { %v2495_v55 = vpop.f32.mrf.mxu1 }
 0xc9d   : > { %v2594_v54 = vpack.c.bf16 %v2495_v55, %v2492_v39 }
 0xc9e   : > { %v3208_v36 = vpop.f32.mrf.mxu1 }
 0xc9f   : > { %3224 = vmatmul.mubr.msk.bf16.vlgmr.msra.gmra.mxu0 %vm396_vm2, %v2594_v54 }
 0xcc9   : > { %v2586_v46 = vpop.f32.mrf.mxu1 }
 0xccb   : > { %v3219_v59 = vpop.f32.mrf.mxu1 }
 0xccd   : > { %v2589_v61 = vpop.f32.mrf.mxu1 }
 0xcce   : > { %v2596_v42 = vpack.c.bf16 %v2589_v61, %v2586_v46 }
 0xccf   : > { %v3220_v58 = vpop.f32.mrf.mxu1 }
 0xcd0   : > { %v2539_v62 = vpop.f32.mrf.mxu0 }
 0xcd2   : > { %v3213_v63 = vpop.f32.mrf.mxu0 }
 0xcd4   : > { %v2542_v1 = vpop.f32.mrf.mxu0 }
 0xcd5   : > { %v2595_v41 = vpack.c.bf16 %v2542_v1, %v2539_v62 }
 0xcd6   : > { %v3214_v2 = vpop.f32.mrf.mxu0 }
 0xcd7   : > { %3227 = vmatprep.mubr.msk.bf16.mxu0 %vm396_vm2, %v2595_v41 }
 0xcd8   : > { %3228 = vmatmul.mubr.msk.bf16.gmra.mxu0 %vm396_vm2, %v2596_v42 }
 0xd5f   : > { %v3225_v15 = vpop.f32.mrf.mxu0 }
 0xd60   : > { %v2681_v3 = vadd.f32 %v3225_v15, %v4214_v60 }
 0xd61   : > { %v2648_v16 = vpop.f32.mrf.mxu0 }
 0xd62   : > { %v2696_v45 = vadd.f32 %v2886_v44, %v2681_v3  ;;  %v2679_v5 = vadd.f32 %v2648_v16, %v4218_v0 }
 0xd63   : > { %v3226_v31 = vpop.f32.mrf.mxu0 }
 0xd64   : > { %2704 = vst.msk [vmem:[%s272_s26 + $0x10] sm:$0xff] %vm311_vm0, %v2696_v45  ;;  %v2694_v34 = vadd.f32 %v2886_v44, %v2679_v5  ;;  %v2682_v17 = vadd.f32 %v3226_v31, %v4222_v4 }
 0xd65   : > { %v2651_v48 = vpop.f32.mrf.mxu0 }
 0xd66   : > { %2702 = vst.msk [vmem:[%s272_s26] sm:$0xff] %vm311_vm0, %v2694_v34  ;;  %v2697_v7 = vadd.f32 %v2886_v44, %v2682_v17  ;;  %v2680_v8 = vadd.f32 %v2651_v48, %v4226_v6 }
 0xd68   : > { %2705 = vst.msk [vmem:[%s272_s26 + $0x18] sm:$0xff] %vm311_vm0, %v2697_v7  ;;  %v2695_v60 = vadd.f32 %v2886_v44, %v2680_v8 }
 0xd6a   : > { %2703 = vst.msk [vmem:[%s272_s26 + $0x8] sm:$0xff] %vm311_vm0, %v2695_v60 }
 0xd98   : > { %v3229_v0 = vpop.f32.mrf.mxu0 }
 0xd99   : > { %v2685_v9 = vadd.f32 %v3229_v0, %v4230_v18 }
 0xd9a   : > { %v2664_v32 = vpop.f32.mrf.mxu0 }
 0xd9b   : > { %v2700_v35 = vadd.f32 %v2886_v44, %v2685_v9  ;;  %v2683_v49 = vadd.f32 %v2664_v32, %v4234_v11 }
 0xd9c   : > { %v3230_v4 = vpop.f32.mrf.mxu0 }
 0xd9d   : > { %2708 = vst.msk [vmem:[%s272_s26 + $0x30] sm:$0xff] %vm311_vm0, %v2700_v35  ;;  %v2698_v10 = vadd.f32 %v2886_v44, %v2683_v49  ;;  %v2686_v6 = vadd.f32 %v3230_v4, %v4238_v51 }
 0xd9e   : > { %v2667_v20 = vpop.f32.mrf.mxu0 }
 0xd9f   : > { %2706 = vst.msk [vmem:[%s272_s26 + $0x20] sm:$0xff] %vm311_vm0, %v2698_v10  ;;  %v2701_v50 = vadd.f32 %v2886_v44, %v2686_v6  ;;  %v2684_v18 = vadd.f32 %v2667_v20, %v4240_v13 }
 0xda1   : > { %2709 = vst.msk [vmem:[%s272_s26 + $0x38] sm:$0xff] %vm311_vm0, %v2701_v50  ;;  %v2699_v11 = vadd.f32 %v2886_v44, %v2684_v18 }
 0xda3   : > { %2707 = vst.msk [vmem:[%s272_s26 + $0x28] sm:$0xff] %vm311_vm0, %v2699_v11 }
 0xda4   : > { %3548 = shalt.err (!%p3545_p9)
}
 0xda5   : > { %s3549_s13 = scalar_lea.hbm %s4313_s12, 1024  ;;  %s3553_s30 = scalar_lea.hbm %s4365_s5, 2048 }
 0xda6   : > { %p3550_p13 = scmp.ne.s32.totalorder %s4313_s12, %s3549_s13  ;;  %p3554_p4 = scmp.lt.s32.totalorder %s4313_s12, %s4365_s5 }
 0xda7   : > { %p3555_p8 = scmp.lt.s32.totalorder %s3553_s30, %s3549_s13 }
 0xda8   : > { %p3551_p5 = pnand %p3550_p13, %p4381_p10 }
 0xda9   : > { %p3556_p3 = por %p3555_p8, %p3554_p4 }
 0xdaa   : > { %p3552_p0 = pneg %p3551_p5 }
 0xdac   : > { %p3557_p11 = pnand %p3556_p3, %p3552_p0 }
 0xdae   : > { %3560 = shalt.err (!%p3557_p11)
}
 0xdaf   : > { %s3626_s17 = smov 128   ;;  %s3627_s10 = smov 8  }
 0xdb0   : > { %3249 = dma.vmem_to_hbm [thread:$0]  (%p4381_p10), %s4315_s8, 1024, %s4313_s12, %s2711_s22, %s3626_s17, %s3626_s17, %s3627_s10  }
 0xdb1 PF: > { %s2740_s11 = sand.u32 1, %s3591_s18   ;;  %p4382_p1 = scmp.ne.s32.totalorder %s4371_s25, 0 }
 0xdb2   : > { %p4383_p2 = scmp.ge.s32.totalorder %s3603_s21, 2  ;;  %s2741_s28 = scalar_lea.sflag [#allocation4], %s2740_s11 }
 0xdb4   : > { %p3263_p6 = pnand %p4383_p2, %p4382_p1 }
 0xdb6   : > { %p3264_p12 = pneg %p3263_p6 }
 0xdb8   : > { %3586 = dma.done.wait (%p3264_p12), %s2741_s28, 1024  }
 0xdb9   : > { %3588 = vsyncadd (%p3264_p12), %s2741_s28, 4294966272  ;;  %p19_p7 = scmp.ge.s32.totalorder %s3730_s15, 4   ;;  %s4384_s18 = smov %s3595_s19 }
 0xdba   : > { %s4385_s19 = smov %s3599_s20  ;;  %s4386_s20 = smov %s3746_s27 }
 0xdbb   : > { %s4387_s21 = smov %s3730_s15  ;;  %21 = sbr.rel (!%p19_p7) target bundleno = 6 (0x6), region = 96 }
 0xdc0   :  { %2746 = vsyncpa [#allocation3], 1 }
 0xdc1   :  { %2748 = vsyncpa [#allocation3 + $0x1], 1 }
 0xdc2   :  { %2749 = vsyncpa [#allocation6], 1 }
 0xdc3   :  { %2750 = vsyncpa [#allocation4], 1 }
 0xdc4   :  { %2752 = vsyncpa [#allocation4 + $0x1], 1 }

</bundles_post_ra>
